<compile_context>
chip_gen: v6e
topology: v6e:2x2x1
jax: 0.10.0
libtpu: 0.0.40
codegen_flags: <defaults>
</compile_context>

<pallas_src>
import functools

import jax
import jax.numpy as jnp
from jax.experimental import pallas as pl
from jax.experimental.pallas import tpu as pltpu


def _layernorm(x, g, b, eps=1e-5):
    mu = jnp.mean(x, axis=-1, keepdims=True)
    var = jnp.mean((x - mu) ** 2, axis=-1, keepdims=True)
    return (x - mu) * jax.lax.rsqrt(var + eps) * g + b


def transformer_stack_kernel(x_ref,
                             ln1_g_ref, ln1_b_ref,
                             wq_ref, wk_ref, wv_ref, wp_ref, bp_ref,
                             ln2_g_ref, ln2_b_ref,
                             w1_ref, b1_ref, w2_ref, b2_ref,
                             o_ref,
                             *, num_heads, weights_resident):
    """One (batch-tile, layer) grid step.

    The activation block (Bt, N, D) stays resident in the output block across
    the layer ("arbitrary") axis.  Weights are either fully resident (indexed
    by the layer id `l`) or streamed per layer (indexed with 0).
    """
    l = pl.program_id(1)
    wl = l if weights_resident else 0
    bf16 = jnp.bfloat16

    bt, n, d = x_ref.shape
    rows = bt * n
    head = d // num_heads

    @pl.when(l == 0)
    def _():
        o_ref[...] = x_ref[...]            # load the input activation once

    x = o_ref[...].reshape(rows, d)        # (rows, D) f32, resident across layers

    # ---- norm1 + multi-head self-attention (q/kv projections have no bias) ----
    xn = _layernorm(x, ln1_g_ref[wl], ln1_b_ref[wl]).astype(bf16)     # (rows, D)
    # lane-dense 2-D projections (scale already folded into wq host-side)
    q = jnp.dot(xn, wq_ref[wl], preferred_element_type=jnp.float32)   # (rows, D)
    k = jnp.dot(xn, wk_ref[wl], preferred_element_type=jnp.float32)
    v = jnp.dot(xn, wv_ref[wl], preferred_element_type=jnp.float32)

    def to_heads(t):                       # (rows, D) -> (Bt*H, N, head)
        t = t.astype(bf16).reshape(bt, n, num_heads, head)
        return jnp.transpose(t, (0, 2, 1, 3)).reshape(bt * num_heads, n, head)

    qh, kh, vh = to_heads(q), to_heads(k), to_heads(v)

    s = jnp.einsum('gnd,gmd->gnm', qh, kh,
                   preferred_element_type=jnp.float32)                # (G, N, N)
    s = s - jnp.max(s, axis=-1, keepdims=True)
    e = jnp.exp(s)                                                    # f32 EUP
    p = e * pl.reciprocal(jnp.sum(e, axis=-1, keepdims=True), approx=True)

    ctx = jnp.einsum('gnm,gmd->gnd', p.astype(bf16), vh,
                     preferred_element_type=jnp.float32)              # (G, N, head)
    ctx = jnp.transpose(ctx.reshape(bt, num_heads, n, head),
                        (0, 2, 1, 3)).reshape(rows, d)                # (rows, D)
    att = jnp.dot(ctx.astype(bf16), wp_ref[wl],
                  preferred_element_type=jnp.float32) + bp_ref[wl]
    x = x + att                                                       # residual 1

    # ---- norm2 + MLP (fc1 -> relu -> fc2); dropout p=0 is identity -------------
    xn2 = _layernorm(x, ln2_g_ref[wl], ln2_b_ref[wl]).astype(bf16)
    h1 = jnp.dot(xn2, w1_ref[wl],
                 preferred_element_type=jnp.float32) + b1_ref[wl]
    h1 = jnp.maximum(h1, 0.0).astype(bf16)
    mlp = jnp.dot(h1, w2_ref[wl],
                  preferred_element_type=jnp.float32) + b2_ref[wl]
    o_ref[...] = (x + mlp).reshape(bt, n, d)                          # residual 2


def transformer_forward(query, layer_params, *, num_heads, batch_tile=None,
                        key_value=None, mask=None):
    """query: (B, N, D) float32.  layer_params: list of per-layer param dicts."""
    if key_value is not None or mask is not None:
        raise NotImplementedError(
            "only the self-attention, mask=None path is implemented")

    b, n, d = query.shape
    assert d % num_heads == 0, "query_size must be divisible by num_heads"
    head = d // num_heads
    scale = head ** (-0.5)
    num_layers = len(layer_params)
    d_hidden = layer_params[0]["w1"].shape[1]
    bf16 = jnp.bfloat16

    # ---- batch tiling: aim for >=256 rows per MXU op, pad batch if needed -----
    if batch_tile is None:
        batch_tile = max(1, min(b, pl.cdiv(256, n)))
    bt = batch_tile
    b_pad = pl.cdiv(b, bt) * bt
    x = query.astype(jnp.float32)
    if b_pad != b:
        x = jnp.pad(x, ((0, b_pad - b), (0, 0), (0, 0)))

    # ---- host-side parameter re-layout (done once, outside the kernel) --------
    def stack(fn):
        return jnp.stack([fn(p) for p in layer_params], axis=0)

    ln1_g = stack(lambda p: p["ln1_g"].reshape(1, d))
    ln1_b = stack(lambda p: p["ln1_b"].reshape(1, d))
    wq = stack(lambda p: (p["wq"] * scale).astype(bf16))      # scale folded in
    wk = stack(lambda p: p["wkv"][:, :d].astype(bf16))        # key columns
    wv = stack(lambda p: p["wkv"][:, d:].astype(bf16))        # value columns
    wp = stack(lambda p: p["wp"].astype(bf16))
    bp = stack(lambda p: p["bp"].reshape(1, d))
    ln2_g = stack(lambda p: p["ln2_g"].reshape(1, d))
    ln2_b = stack(lambda p: p["ln2_b"].reshape(1, d))
    w1 = stack(lambda p: p["w1"].astype(bf16))
    b1 = stack(lambda p: p["b1"].reshape(1, d_hidden))
    w2 = stack(lambda p: p["w2"].astype(bf16))
    b2 = stack(lambda p: p["b2"].reshape(1, d))

    weight_args = (ln1_g, ln1_b, wq, wk, wv, wp, bp, ln2_g, ln2_b,
                   w1, b1, w2, b2)
    weight_bytes = sum(int(a.size) * a.dtype.itemsize for a in weight_args)

    # Whole-stack weight residency if it fits comfortably (v5e/v6e: 128 MiB
    # VMEM, v7x: 64 MiB); otherwise fall back to per-layer streaming.
    weights_resident = weight_bytes <= (40 << 20)

    def act_spec():
        return pl.BlockSpec((bt, n, d), lambda bi, l: (bi, 0, 0))

    def resident_spec(shape):          # whole stacked array resident in VMEM
        nd = len(shape)
        return pl.BlockSpec(shape, lambda bi, l, _nd=nd: (0,) * _nd)

    def stream_spec(shape):            # one layer streamed per grid step
        nd = len(shape)
        return pl.BlockSpec((1,) + shape[1:],
                            lambda bi, l, _nd=nd: (l,) + (0,) * (_nd - 1))

    w_spec = resident_spec if weights_resident else stream_spec
    in_specs = [act_spec()] + [w_spec(a.shape) for a in weight_args]

    # ---- VMEM budget & advisory cost estimate ----------------------------------
    act_block_bytes = bt * n * d * 4
    if weights_resident:
        vmem_est = weight_bytes + 8 * act_block_bytes + (2 << 20)
    else:
        vmem_est = 3 * (weight_bytes // max(num_layers, 1)) \
            + 8 * act_block_bytes + (2 << 20)
    # cap at 64 MiB so the same setting stays legal on v7x
    vmem_limit = int(min(max(vmem_est * 2, 32 << 20), 64 << 20))

    flops_per_row_layer = (2 * d * (3 * d)            # q/k/v projections
                           + 2 * 2 * n * d            # scores + ctx
                           + 2 * d * d                # output projection
                           + 2 * 2 * d * d_hidden)    # fc1 + fc2
    cost = pl.CostEstimate(
        flops=int(b_pad * n * num_layers * flops_per_row_layer),
        transcendentals=int(b_pad * num_heads * n * n * num_layers),
        bytes_accessed=int(x.size * 4 * 2 + weight_bytes *
                           (1 if weights_resident else (b_pad // bt))),
    )

    kernel = functools.partial(transformer_stack_kernel,
                               num_heads=num_heads,
                               weights_resident=weights_resident)
    out = pl.pallas_call(
        kernel,
        out_shape=jax.ShapeDtypeStruct((b_pad, n, d), jnp.float32),
        grid=(b_pad // bt, num_layers),             # layer axis innermost
        in_specs=in_specs,
        out_specs=act_spec(),
        compiler_params=pltpu.CompilerParams(
            dimension_semantics=("parallel", "arbitrary"),
            vmem_limit_bytes=vmem_limit),
        cost_estimate=cost,
    )(x, *weight_args)

    return out[:b] if b_pad != b else out


# ------------------------- pure-JAX reference ---------------------------------
def _ref_forward(query, layer_params, *, num_heads):
    hi = jax.lax.Precision.HIGHEST
    b, n, d = query.shape
    head = d // num_heads
    scale = head ** (-0.5)
    x = query.astype(jnp.float32)

    def ln(v, g, bta):
        mu = jnp.mean(v, axis=-1, keepdims=True)
        var = jnp.mean((v - mu) ** 2, axis=-1, keepdims=True)
        return (v - mu) * jax.lax.rsqrt(var + 1e-5) * g + bta

    for p in layer_params:
        xn = ln(x, p["ln1_g"][0], p["ln1_b"][0])
        q = jnp.einsum("bnd,de->bne", xn, p["wq"], precision=hi)
        kvv = jnp.einsum("bnd,de->bne", xn, p["wkv"], precision=hi)
        kv = kvv.reshape(b, n, 2, num_heads, head)
        qh = q.reshape(b, n, num_heads, head)
        kh, vh = kv[:, :, 0], kv[:, :, 1]
        att = jnp.einsum("bnhd,bmhd->bnmh", qh, kh, precision=hi) * scale
        att = jax.nn.softmax(att, axis=2)
        out = jnp.einsum("bnmh,bmhd->bnhd", att, vh,
                         precision=hi).reshape(b, n, d)
        out = jnp.einsum("bnd,de->bne", out, p["wp"], precision=hi) + p["bp"][0]
        x = x + out
        xn2 = ln(x, p["ln2_g"][0], p["ln2_b"][0])
        h1 = jnp.maximum(
            jnp.einsum("bnd,de->bne", xn2, p["w1"], precision=hi) + p["b1"][0], 0.0)
        x = x + jnp.einsum("bnd,de->bne", h1, p["w2"], precision=hi) + p["b2"][0]
    return x


# ------------------------- deterministic param init ---------------------------
def make_layer_params(key, d, d_hidden):
    ks = jax.random.split(key, 6)
    s = 0.05
    return {
        "ln1_g": jnp.ones((1, d), jnp.float32),
        "ln1_b": jnp.zeros((1, d), jnp.float32),
        # attention: to_queries / to_keys_values have bias=False, project has bias.
        "wq":  s * jax.random.normal(ks[0], (d, d), jnp.float32),
        "wkv": s * jax.random.normal(ks[1], (d, 2 * d), jnp.float32),
        "wp":  s * jax.random.normal(ks[2], (d, d), jnp.float32),
        "bp":  s * jax.random.normal(ks[3], (1, d), jnp.float32),
        "ln2_g": jnp.ones((1, d), jnp.float32),
        "ln2_b": jnp.zeros((1, d), jnp.float32),
        "w1": s * jax.random.normal(ks[4], (d, d_hidden), jnp.float32),
        "b1": jnp.zeros((1, d_hidden), jnp.float32),
        "w2": s * jax.random.normal(ks[5], (d_hidden, d), jnp.float32),
        "b2": jnp.zeros((1, d), jnp.float32),
    }


if __name__ == "__main__":
    B, N, D = 2, 8, 32           # batch, prefix length, query_size
    NUM_HEADS = 4
    NUM_LAYERS = 2
    MLP_RATIO = 2.0              # Transformer default
    D_HIDDEN = int(D * MLP_RATIO)

    key = jax.random.PRNGKey(0)
    key, kq = jax.random.split(key)
    query = jax.random.normal(kq, (B, N, D), dtype=jnp.float32)

    layer_params = []
    for _ in range(NUM_LAYERS):
        key, kl = jax.random.split(key)
        layer_params.append(make_layer_params(kl, D, D_HIDDEN))

    out = transformer_forward(query, layer_params, num_heads=NUM_HEADS)
    out = jax.block_until_ready(out)

    ref = _ref_forward(query, layer_params, num_heads=NUM_HEADS)
    assert out.shape == (B, N, D)
    # bf16 MXU operands (f32 accumulate) + approx reciprocal -> relaxed tolerance
    assert jnp.allclose(out, ref, atol=3e-2, rtol=3e-2), "mismatch vs JAX reference"

    print("KERNEL_OK")
</pallas_src>

<mosaic_0001>
module attributes {stable_mosaic.version = 11 : i64} {
  func.func @transformer_stack_kernel(%arg0: i32, %arg1: i32, %arg2: memref<2x8x32xf32, #tpu.memory_space<vmem>>, %arg3: memref<2x1x32xf32, #tpu.memory_space<vmem>>, %arg4: memref<2x1x32xf32, #tpu.memory_space<vmem>>, %arg5: memref<2x32x32xbf16, #tpu.memory_space<vmem>>, %arg6: memref<2x32x32xbf16, #tpu.memory_space<vmem>>, %arg7: memref<2x32x32xbf16, #tpu.memory_space<vmem>>, %arg8: memref<2x32x32xbf16, #tpu.memory_space<vmem>>, %arg9: memref<2x1x32xf32, #tpu.memory_space<vmem>>, %arg10: memref<2x1x32xf32, #tpu.memory_space<vmem>>, %arg11: memref<2x1x32xf32, #tpu.memory_space<vmem>>, %arg12: memref<2x32x64xbf16, #tpu.memory_space<vmem>>, %arg13: memref<2x1x64xf32, #tpu.memory_space<vmem>>, %arg14: memref<2x64x32xbf16, #tpu.memory_space<vmem>>, %arg15: memref<2x1x32xf32, #tpu.memory_space<vmem>>, %arg16: memref<2x8x32xf32, #tpu.memory_space<vmem>>) attributes {dimension_semantics = [#tpu.dimension_semantics<parallel>, #tpu.dimension_semantics<arbitrary>], iteration_bounds = array<i64: 1, 2>, scalar_prefetch = 0 : i64, scratch_operands = 0 : i64, tpu.core_type = #tpu.core_type<tc>, window_params = [{transform_indices = @transform_0, window_bounds = array<i64: 2, 8, 32>}, {pipeline_mode = #tpu.pipeline_mode<synchronous>, transform_indices = @transform_1, window_bounds = array<i64: 2, 1, 32>}, {pipeline_mode = #tpu.pipeline_mode<synchronous>, transform_indices = @transform_2, window_bounds = array<i64: 2, 1, 32>}, {pipeline_mode = #tpu.pipeline_mode<synchronous>, transform_indices = @transform_3, window_bounds = array<i64: 2, 32, 32>}, {pipeline_mode = #tpu.pipeline_mode<synchronous>, transform_indices = @transform_4, window_bounds = array<i64: 2, 32, 32>}, {pipeline_mode = #tpu.pipeline_mode<synchronous>, transform_indices = @transform_5, window_bounds = array<i64: 2, 32, 32>}, {pipeline_mode = #tpu.pipeline_mode<synchronous>, transform_indices = @transform_6, window_bounds = array<i64: 2, 32, 32>}, {pipeline_mode = #tpu.pipeline_mode<synchronous>, transform_indices = @transform_7, window_bounds = array<i64: 2, 1, 32>}, {pipeline_mode = #tpu.pipeline_mode<synchronous>, transform_indices = @transform_8, window_bounds = array<i64: 2, 1, 32>}, {pipeline_mode = #tpu.pipeline_mode<synchronous>, transform_indices = @transform_9, window_bounds = array<i64: 2, 1, 32>}, {pipeline_mode = #tpu.pipeline_mode<synchronous>, transform_indices = @transform_10, window_bounds = array<i64: 2, 32, 64>}, {pipeline_mode = #tpu.pipeline_mode<synchronous>, transform_indices = @transform_11, window_bounds = array<i64: 2, 1, 64>}, {pipeline_mode = #tpu.pipeline_mode<synchronous>, transform_indices = @transform_12, window_bounds = array<i64: 2, 64, 32>}, {pipeline_mode = #tpu.pipeline_mode<synchronous>, transform_indices = @transform_13, window_bounds = array<i64: 2, 1, 32>}, {transform_indices = @transform_14, window_bounds = array<i64: 2, 8, 32>}]} {
    %c0_i32 = arith.constant 0 : i32
    %0 = arith.cmpi eq, %arg1, %c0_i32 : i32
    %1 = arith.extui %0 : i1 to i32
    %c0_i32_0 = arith.constant 0 : i32
    %2 = arith.cmpi ne, %1, %c0_i32_0 : i32
    scf.if %2 {
      %c0_52 = arith.constant 0 : index
      %c0_53 = arith.constant 0 : index
      %c0_54 = arith.constant 0 : index
      %138 = vector.load %arg2[%c0_52, %c0_53, %c0_54] : memref<2x8x32xf32, #tpu.memory_space<vmem>>, vector<2x8x32xf32>
      %c0_55 = arith.constant 0 : index
      %c0_56 = arith.constant 0 : index
      %c0_57 = arith.constant 0 : index
      %139 = vector.load %arg16[%c0_55, %c0_56, %c0_57] : memref<2x8x32xf32, #tpu.memory_space<vmem>>, vector<2x8x32xf32>
      tpu.vector_store %arg16[%c0_55, %c0_56, %c0_57], %138 {strides = array<i32>} : memref<2x8x32xf32, #tpu.memory_space<vmem>>, vector<2x8x32xf32>,
    } else {
    }
    %c0 = arith.constant 0 : index
    %c0_1 = arith.constant 0 : index
    %c0_2 = arith.constant 0 : index
    %3 = vector.load %arg16[%c0, %c0_1, %c0_2] : memref<2x8x32xf32, #tpu.memory_space<vmem>>, vector<2x8x32xf32>
    %4 = vector.shape_cast %3 : vector<2x8x32xf32> to vector<16x32xf32>
    %5 = arith.index_cast %arg1 : i32 to index
    %c0_3 = arith.constant 0 : index
    %c0_4 = arith.constant 0 : index
    %6 = vector.load %arg3[%5, %c0_3, %c0_4] : memref<2x1x32xf32, #tpu.memory_space<vmem>>, vector<1x1x32xf32>
    %7 = vector.shape_cast %6 : vector<1x1x32xf32> to vector<1x32xf32>
    %8 = arith.index_cast %arg1 : i32 to index
    %c0_5 = arith.constant 0 : index
    %c0_6 = arith.constant 0 : index
    %9 = vector.load %arg4[%8, %c0_5, %c0_6] : memref<2x1x32xf32, #tpu.memory_space<vmem>>, vector<1x1x32xf32>
    %10 = vector.shape_cast %9 : vector<1x1x32xf32> to vector<1x32xf32>
    %cst = arith.constant dense<0.000000e+00> : vector<16xf32>
    %11 = vector.multi_reduction <add>, %4, %cst [1] : vector<16x32xf32> to vector<16xf32>
    %12 = vector.shape_cast %11 : vector<16xf32> to vector<16x1xf32>
    %cst_7 = arith.constant 3.200000e+01 : f32
    %13 = vector.broadcast %cst_7 : f32 to vector<16x1xf32>
    %14 = arith.divf %12, %13 : vector<16x1xf32>
    %15 = vector.broadcast %14 : vector<16x1xf32> to vector<16x32xf32>
    %16 = arith.subf %4, %15 : vector<16x32xf32>
    %17 = arith.mulf %16, %16 : vector<16x32xf32>
    %cst_8 = arith.constant dense<0.000000e+00> : vector<16xf32>
    %18 = vector.multi_reduction <add>, %17, %cst_8 [1] : vector<16x32xf32> to vector<16xf32>
    %19 = vector.shape_cast %18 : vector<16xf32> to vector<16x1xf32>
    %cst_9 = arith.constant 3.200000e+01 : f32
    %20 = vector.broadcast %cst_9 : f32 to vector<16x1xf32>
    %21 = arith.divf %19, %20 : vector<16x1xf32>
    %22 = vector.broadcast %14 : vector<16x1xf32> to vector<16x32xf32>
    %23 = arith.subf %4, %22 : vector<16x32xf32>
    %cst_10 = arith.constant 9.99999974E-6 : f32
    %24 = vector.broadcast %cst_10 : f32 to vector<16x1xf32>
    %25 = arith.addf %21, %24 : vector<16x1xf32>
    %26 = math.rsqrt %25 : vector<16x1xf32>
    %27 = vector.broadcast %26 : vector<16x1xf32> to vector<16x32xf32>
    %28 = arith.mulf %23, %27 : vector<16x32xf32>
    %29 = vector.broadcast %7 : vector<1x32xf32> to vector<16x32xf32>
    %30 = arith.mulf %28, %29 : vector<16x32xf32>
    %31 = vector.broadcast %10 : vector<1x32xf32> to vector<16x32xf32>
    %32 = arith.addf %30, %31 : vector<16x32xf32>
    %33 = arith.truncf %32 : vector<16x32xf32> to vector<16x32xbf16>
    %34 = arith.index_cast %arg1 : i32 to index
    %c0_11 = arith.constant 0 : index
    %c0_12 = arith.constant 0 : index
    %35 = vector.load %arg5[%34, %c0_11, %c0_12] : memref<2x32x32xbf16, #tpu.memory_space<vmem>>, vector<1x32x32xbf16>
    %36 = vector.shape_cast %35 : vector<1x32x32xbf16> to vector<32x32xbf16>
    %cst_13 = arith.constant dense<0.000000e+00> : vector<16x32xf32>
    %37 = tpu.matmul %33, %36, %cst_13 {dimension_numbers = #tpu.dot_dimension_numbers<[1], [0], [0], [1], [0, 0, 1, 1], [], []>} : vector<16x32xbf16>, vector<32x32xbf16>, vector<16x32xf32> -> vector<16x32xf32>
    %38 = arith.index_cast %arg1 : i32 to index
    %c0_14 = arith.constant 0 : index
    %c0_15 = arith.constant 0 : index
    %39 = vector.load %arg6[%38, %c0_14, %c0_15] : memref<2x32x32xbf16, #tpu.memory_space<vmem>>, vector<1x32x32xbf16>
    %40 = vector.shape_cast %39 : vector<1x32x32xbf16> to vector<32x32xbf16>
    %cst_16 = arith.constant dense<0.000000e+00> : vector<16x32xf32>
    %41 = tpu.matmul %33, %40, %cst_16 {dimension_numbers = #tpu.dot_dimension_numbers<[1], [0], [0], [1], [0, 0, 1, 1], [], []>} : vector<16x32xbf16>, vector<32x32xbf16>, vector<16x32xf32> -> vector<16x32xf32>
    %42 = arith.index_cast %arg1 : i32 to index
    %c0_17 = arith.constant 0 : index
    %c0_18 = arith.constant 0 : index
    %43 = vector.load %arg7[%42, %c0_17, %c0_18] : memref<2x32x32xbf16, #tpu.memory_space<vmem>>, vector<1x32x32xbf16>
    %44 = vector.shape_cast %43 : vector<1x32x32xbf16> to vector<32x32xbf16>
    %cst_19 = arith.constant dense<0.000000e+00> : vector<16x32xf32>
    %45 = tpu.matmul %33, %44, %cst_19 {dimension_numbers = #tpu.dot_dimension_numbers<[1], [0], [0], [1], [0, 0, 1, 1], [], []>} : vector<16x32xbf16>, vector<32x32xbf16>, vector<16x32xf32> -> vector<16x32xf32>
    %46 = arith.truncf %37 : vector<16x32xf32> to vector<16x32xbf16>
    %47 = vector.shape_cast %46 : vector<16x32xbf16> to vector<2x8x4x8xbf16>
    %48 = tpu.transpose %47, [0, 2, 1, 3] : vector<2x8x4x8xbf16> -> vector<2x4x8x8xbf16>
    %49 = vector.shape_cast %48 : vector<2x4x8x8xbf16> to vector<8x8x8xbf16>
    %50 = arith.truncf %41 : vector<16x32xf32> to vector<16x32xbf16>
    %51 = vector.shape_cast %50 : vector<16x32xbf16> to vector<2x8x4x8xbf16>
    %52 = tpu.transpose %51, [0, 2, 1, 3] : vector<2x8x4x8xbf16> -> vector<2x4x8x8xbf16>
    %53 = vector.shape_cast %52 : vector<2x4x8x8xbf16> to vector<8x8x8xbf16>
    %54 = arith.truncf %45 : vector<16x32xf32> to vector<16x32xbf16>
    %55 = vector.shape_cast %54 : vector<16x32xbf16> to vector<2x8x4x8xbf16>
    %56 = tpu.transpose %55, [0, 2, 1, 3] : vector<2x8x4x8xbf16> -> vector<2x4x8x8xbf16>
    %57 = vector.shape_cast %56 : vector<2x4x8x8xbf16> to vector<8x8x8xbf16>
    "tpu.trace_start"() <{level = 10 : i32, message = "gnd,gmd->gnm"}> : () -> ()
    %cst_20 = arith.constant dense<0.000000e+00> : vector<8x8x8xf32>
    %58 = tpu.matmul %49, %53, %cst_20 {dimension_numbers = #tpu.dot_dimension_numbers<[2], [2], [1], [1], [0, 0, 0, 1, 1, 1], [0], [0]>} : vector<8x8x8xbf16>, vector<8x8x8xbf16>, vector<8x8x8xf32> -> vector<8x8x8xf32>
    "tpu.trace_stop"() : () -> ()
    %cst_21 = arith.constant dense<0xFF800000> : vector<8x8xf32>
    %59 = vector.multi_reduction <maximumf>, %58, %cst_21 [2] : vector<8x8x8xf32> to vector<8x8xf32>
    %60 = vector.shape_cast %59 : vector<8x8xf32> to vector<8x8x1xf32>
    %61 = vector.broadcast %60 : vector<8x8x1xf32> to vector<8x8x8xf32>
    %62 = arith.subf %58, %61 : vector<8x8x8xf32>
    %63 = math.exp %62 : vector<8x8x8xf32>
    %cst_22 = arith.constant dense<0.000000e+00> : vector<8x8xf32>
    %64 = vector.multi_reduction <add>, %63, %cst_22 [2] : vector<8x8x8xf32> to vector<8x8xf32>
    %65 = vector.shape_cast %64 : vector<8x8xf32> to vector<8x8x1xf32>
    %66 = tpu.reciprocal %65 {approx = true} : vector<8x8x1xf32> -> vector<8x8x1xf32>
    %67 = vector.broadcast %66 : vector<8x8x1xf32> to vector<8x8x8xf32>
    %68 = arith.mulf %63, %67 : vector<8x8x8xf32>
    %69 = arith.truncf %68 : vector<8x8x8xf32> to vector<8x8x8xbf16>
    "tpu.trace_start"() <{level = 10 : i32, message = "gnm,gmd->gnd"}> : () -> ()
    %cst_23 = arith.constant dense<0.000000e+00> : vector<8x8x8xf32>
    %70 = tpu.matmul %69, %57, %cst_23 {dimension_numbers = #tpu.dot_dimension_numbers<[2], [1], [1], [2], [0, 0, 0, 1, 1, 2], [0], [0]>} : vector<8x8x8xbf16>, vector<8x8x8xbf16>, vector<8x8x8xf32> -> vector<8x8x8xf32>
    "tpu.trace_stop"() : () -> ()
    %71 = vector.shape_cast %70 : vector<8x8x8xf32> to vector<2x4x8x8xf32>
    %72 = tpu.transpose %71, [0, 2, 1, 3] : vector<2x4x8x8xf32> -> vector<2x8x4x8xf32>
    %73 = vector.shape_cast %72 : vector<2x8x4x8xf32> to vector<16x32xf32>
    %74 = arith.truncf %73 : vector<16x32xf32> to vector<16x32xbf16>
    %75 = arith.index_cast %arg1 : i32 to index
    %c0_24 = arith.constant 0 : index
    %c0_25 = arith.constant 0 : index
    %76 = vector.load %arg8[%75, %c0_24, %c0_25] : memref<2x32x32xbf16, #tpu.memory_space<vmem>>, vector<1x32x32xbf16>
    %77 = vector.shape_cast %76 : vector<1x32x32xbf16> to vector<32x32xbf16>
    %cst_26 = arith.constant dense<0.000000e+00> : vector<16x32xf32>
    %78 = tpu.matmul %74, %77, %cst_26 {dimension_numbers = #tpu.dot_dimension_numbers<[1], [0], [0], [1], [0, 0, 1, 1], [], []>} : vector<16x32xbf16>, vector<32x32xbf16>, vector<16x32xf32> -> vector<16x32xf32>
    %79 = arith.index_cast %arg1 : i32 to index
    %c0_27 = arith.constant 0 : index
    %c0_28 = arith.constant 0 : index
    %80 = vector.load %arg9[%79, %c0_27, %c0_28] : memref<2x1x32xf32, #tpu.memory_space<vmem>>, vector<1x1x32xf32>
    %81 = vector.shape_cast %80 : vector<1x1x32xf32> to vector<1x32xf32>
    %82 = vector.broadcast %81 : vector<1x32xf32> to vector<16x32xf32>
    %83 = arith.addf %78, %82 : vector<16x32xf32>
    %84 = arith.addf %4, %83 : vector<16x32xf32>
    %85 = arith.index_cast %arg1 : i32 to index
    %c0_29 = arith.constant 0 : index
    %c0_30 = arith.constant 0 : index
    %86 = vector.load %arg10[%85, %c0_29, %c0_30] : memref<2x1x32xf32, #tpu.memory_space<vmem>>, vector<1x1x32xf32>
    %87 = vector.shape_cast %86 : vector<1x1x32xf32> to vector<1x32xf32>
    %88 = arith.index_cast %arg1 : i32 to index
    %c0_31 = arith.constant 0 : index
    %c0_32 = arith.constant 0 : index
    %89 = vector.load %arg11[%88, %c0_31, %c0_32] : memref<2x1x32xf32, #tpu.memory_space<vmem>>, vector<1x1x32xf32>
    %90 = vector.shape_cast %89 : vector<1x1x32xf32> to vector<1x32xf32>
    %cst_33 = arith.constant dense<0.000000e+00> : vector<16xf32>
    %91 = vector.multi_reduction <add>, %84, %cst_33 [1] : vector<16x32xf32> to vector<16xf32>
    %92 = vector.shape_cast %91 : vector<16xf32> to vector<16x1xf32>
    %cst_34 = arith.constant 3.200000e+01 : f32
    %93 = vector.broadcast %cst_34 : f32 to vector<16x1xf32>
    %94 = arith.divf %92, %93 : vector<16x1xf32>
    %95 = vector.broadcast %94 : vector<16x1xf32> to vector<16x32xf32>
    %96 = arith.subf %84, %95 : vector<16x32xf32>
    %97 = arith.mulf %96, %96 : vector<16x32xf32>
    %cst_35 = arith.constant dense<0.000000e+00> : vector<16xf32>
    %98 = vector.multi_reduction <add>, %97, %cst_35 [1] : vector<16x32xf32> to vector<16xf32>
    %99 = vector.shape_cast %98 : vector<16xf32> to vector<16x1xf32>
    %cst_36 = arith.constant 3.200000e+01 : f32
    %100 = vector.broadcast %cst_36 : f32 to vector<16x1xf32>
    %101 = arith.divf %99, %100 : vector<16x1xf32>
    %102 = vector.broadcast %94 : vector<16x1xf32> to vector<16x32xf32>
    %103 = arith.subf %84, %102 : vector<16x32xf32>
    %cst_37 = arith.constant 9.99999974E-6 : f32
    %104 = vector.broadcast %cst_37 : f32 to vector<16x1xf32>
    %105 = arith.addf %101, %104 : vector<16x1xf32>
    %106 = math.rsqrt %105 : vector<16x1xf32>
    %107 = vector.broadcast %106 : vector<16x1xf32> to vector<16x32xf32>
    %108 = arith.mulf %103, %107 : vector<16x32xf32>
    %109 = vector.broadcast %87 : vector<1x32xf32> to vector<16x32xf32>
    %110 = arith.mulf %108, %109 : vector<16x32xf32>
    %111 = vector.broadcast %90 : vector<1x32xf32> to vector<16x32xf32>
    %112 = arith.addf %110, %111 : vector<16x32xf32>
    %113 = arith.truncf %112 : vector<16x32xf32> to vector<16x32xbf16>
    %114 = arith.index_cast %arg1 : i32 to index
    %c0_38 = arith.constant 0 : index
    %c0_39 = arith.constant 0 : index
    %115 = vector.load %arg12[%114, %c0_38, %c0_39] : memref<2x32x64xbf16, #tpu.memory_space<vmem>>, vector<1x32x64xbf16>
    %116 = vector.shape_cast %115 : vector<1x32x64xbf16> to vector<32x64xbf16>
    %cst_40 = arith.constant dense<0.000000e+00> : vector<16x64xf32>
    %117 = tpu.matmul %113, %116, %cst_40 {dimension_numbers = #tpu.dot_dimension_numbers<[1], [0], [0], [1], [0, 0, 1, 1], [], []>} : vector<16x32xbf16>, vector<32x64xbf16>, vector<16x64xf32> -> vector<16x64xf32>
    %118 = arith.index_cast %arg1 : i32 to index
    %c0_41 = arith.constant 0 : index
    %c0_42 = arith.constant 0 : index
    %119 = vector.load %arg13[%118, %c0_41, %c0_42] : memref<2x1x64xf32, #tpu.memory_space<vmem>>, vector<1x1x64xf32>
    %120 = vector.shape_cast %119 : vector<1x1x64xf32> to vector<1x64xf32>
    %121 = vector.broadcast %120 : vector<1x64xf32> to vector<16x64xf32>
    %122 = arith.addf %117, %121 : vector<16x64xf32>
    %cst_43 = arith.constant 0.000000e+00 : f32
    %123 = vector.broadcast %cst_43 : f32 to vector<16x64xf32>
    %124 = arith.maximumf %122, %123 : vector<16x64xf32>
    %125 = arith.truncf %124 : vector<16x64xf32> to vector<16x64xbf16>
    %126 = arith.index_cast %arg1 : i32 to index
    %c0_44 = arith.constant 0 : index
    %c0_45 = arith.constant 0 : index
    %127 = vector.load %arg14[%126, %c0_44, %c0_45] : memref<2x64x32xbf16, #tpu.memory_space<vmem>>, vector<1x64x32xbf16>
    %128 = vector.shape_cast %127 : vector<1x64x32xbf16> to vector<64x32xbf16>
    %cst_46 = arith.constant dense<0.000000e+00> : vector<16x32xf32>
    %129 = tpu.matmul %125, %128, %cst_46 {dimension_numbers = #tpu.dot_dimension_numbers<[1], [0], [0], [1], [0, 0, 1, 1], [], []>} : vector<16x64xbf16>, vector<64x32xbf16>, vector<16x32xf32> -> vector<16x32xf32>
    %130 = arith.index_cast %arg1 : i32 to index
    %c0_47 = arith.constant 0 : index
    %c0_48 = arith.constant 0 : index
    %131 = vector.load %arg15[%130, %c0_47, %c0_48] : memref<2x1x32xf32, #tpu.memory_space<vmem>>, vector<1x1x32xf32>
    %132 = vector.shape_cast %131 : vector<1x1x32xf32> to vector<1x32xf32>
    %133 = vector.broadcast %132 : vector<1x32xf32> to vector<16x32xf32>
    %134 = arith.addf %129, %133 : vector<16x32xf32>
    %135 = arith.addf %84, %134 : vector<16x32xf32>
    %136 = vector.shape_cast %135 : vector<16x32xf32> to vector<2x8x32xf32>
    %c0_49 = arith.constant 0 : index
    %c0_50 = arith.constant 0 : index
    %c0_51 = arith.constant 0 : index
    %137 = vector.load %arg16[%c0_49, %c0_50, %c0_51] : memref<2x8x32xf32, #tpu.memory_space<vmem>>, vector<2x8x32xf32>
    tpu.vector_store %arg16[%c0_49, %c0_50, %c0_51], %136 {strides = array<i32>} : memref<2x8x32xf32, #tpu.memory_space<vmem>>, vector<2x8x32xf32>,
    return
  }
  func.func @transform_0(%arg0: i32, %arg1: i32) -> (i32, i32, i32) {
    %c0_i32 = arith.constant 0 : i32
    %c0_i32_0 = arith.constant 0 : i32
    %c0_i32_1 = arith.constant 0 : i32
    return %arg0, %c0_i32, %c0_i32_0 : i32, i32, i32
  }
  func.func @transform_1(%arg0: i32, %arg1: i32) -> (i32, i32, i32) {
    %c0_i32 = arith.constant 0 : i32
    %c0_i32_0 = arith.constant 0 : i32
    %c0_i32_1 = arith.constant 0 : i32
    %c0_i32_2 = arith.constant 0 : i32
    return %c0_i32, %c0_i32_0, %c0_i32_1 : i32, i32, i32
  }
  func.func @transform_2(%arg0: i32, %arg1: i32) -> (i32, i32, i32) {
    %c0_i32 = arith.constant 0 : i32
    %c0_i32_0 = arith.constant 0 : i32
    %c0_i32_1 = arith.constant 0 : i32
    %c0_i32_2 = arith.constant 0 : i32
    return %c0_i32, %c0_i32_0, %c0_i32_1 : i32, i32, i32
  }
  func.func @transform_3(%arg0: i32, %arg1: i32) -> (i32, i32, i32) {
    %c0_i32 = arith.constant 0 : i32
    %c0_i32_0 = arith.constant 0 : i32
    %c0_i32_1 = arith.constant 0 : i32
    %c0_i32_2 = arith.constant 0 : i32
    return %c0_i32, %c0_i32_0, %c0_i32_1 : i32, i32, i32
  }
  func.func @transform_4(%arg0: i32, %arg1: i32) -> (i32, i32, i32) {
    %c0_i32 = arith.constant 0 : i32
    %c0_i32_0 = arith.constant 0 : i32
    %c0_i32_1 = arith.constant 0 : i32
    %c0_i32_2 = arith.constant 0 : i32
    return %c0_i32, %c0_i32_0, %c0_i32_1 : i32, i32, i32
  }
  func.func @transform_5(%arg0: i32, %arg1: i32) -> (i32, i32, i32) {
    %c0_i32 = arith.constant 0 : i32
    %c0_i32_0 = arith.constant 0 : i32
    %c0_i32_1 = arith.constant 0 : i32
    %c0_i32_2 = arith.constant 0 : i32
    return %c0_i32, %c0_i32_0, %c0_i32_1 : i32, i32, i32
  }
  func.func @transform_6(%arg0: i32, %arg1: i32) -> (i32, i32, i32) {
    %c0_i32 = arith.constant 0 : i32
    %c0_i32_0 = arith.constant 0 : i32
    %c0_i32_1 = arith.constant 0 : i32
    %c0_i32_2 = arith.constant 0 : i32
    return %c0_i32, %c0_i32_0, %c0_i32_1 : i32, i32, i32
  }
  func.func @transform_7(%arg0: i32, %arg1: i32) -> (i32, i32, i32) {
    %c0_i32 = arith.constant 0 : i32
    %c0_i32_0 = arith.constant 0 : i32
    %c0_i32_1 = arith.constant 0 : i32
    %c0_i32_2 = arith.constant 0 : i32
    return %c0_i32, %c0_i32_0, %c0_i32_1 : i32, i32, i32
  }
  func.func @transform_8(%arg0: i32, %arg1: i32) -> (i32, i32, i32) {
    %c0_i32 = arith.constant 0 : i32
    %c0_i32_0 = arith.constant 0 : i32
    %c0_i32_1 = arith.constant 0 : i32
    %c0_i32_2 = arith.constant 0 : i32
    return %c0_i32, %c0_i32_0, %c0_i32_1 : i32, i32, i32
  }
  func.func @transform_9(%arg0: i32, %arg1: i32) -> (i32, i32, i32) {
    %c0_i32 = arith.constant 0 : i32
    %c0_i32_0 = arith.constant 0 : i32
    %c0_i32_1 = arith.constant 0 : i32
    %c0_i32_2 = arith.constant 0 : i32
    return %c0_i32, %c0_i32_0, %c0_i32_1 : i32, i32, i32
  }
  func.func @transform_10(%arg0: i32, %arg1: i32) -> (i32, i32, i32) {
    %c0_i32 = arith.constant 0 : i32
    %c0_i32_0 = arith.constant 0 : i32
    %c0_i32_1 = arith.constant 0 : i32
    %c0_i32_2 = arith.constant 0 : i32
    return %c0_i32, %c0_i32_0, %c0_i32_1 : i32, i32, i32
  }
  func.func @transform_11(%arg0: i32, %arg1: i32) -> (i32, i32, i32) {
    %c0_i32 = arith.constant 0 : i32
    %c0_i32_0 = arith.constant 0 : i32
    %c0_i32_1 = arith.constant 0 : i32
    %c0_i32_2 = arith.constant 0 : i32
    return %c0_i32, %c0_i32_0, %c0_i32_1 : i32, i32, i32
  }
  func.func @transform_12(%arg0: i32, %arg1: i32) -> (i32, i32, i32) {
    %c0_i32 = arith.constant 0 : i32
    %c0_i32_0 = arith.constant 0 : i32
    %c0_i32_1 = arith.constant 0 : i32
    %c0_i32_2 = arith.constant 0 : i32
    return %c0_i32, %c0_i32_0, %c0_i32_1 : i32, i32, i32
  }
  func.func @transform_13(%arg0: i32, %arg1: i32) -> (i32, i32, i32) {
    %c0_i32 = arith.constant 0 : i32
    %c0_i32_0 = arith.constant 0 : i32
    %c0_i32_1 = arith.constant 0 : i32
    %c0_i32_2 = arith.constant 0 : i32
    return %c0_i32, %c0_i32_0, %c0_i32_1 : i32, i32, i32
  }
  func.func @transform_14(%arg0: i32, %arg1: i32) -> (i32, i32, i32) {
    %c0_i32 = arith.constant 0 : i32
    %c0_i32_0 = arith.constant 0 : i32
    %c0_i32_1 = arith.constant 0 : i32
    return %arg0, %c0_i32, %c0_i32_0 : i32, i32, i32
  }
}

</mosaic_0001>

<bundles_post_ra>
// kernel: tpu_custom_call.1
= control target key start
LH: loop header
LB: loop body
LE: loop exit
PB: predicated region body
PF: predicated region fallthrough
CT: control target
= control target key end

     0   :  { %s4423_s0 = inlined_call_operand.hbm [shape: f32[2,8,32], index: 0, kind: input, shape index: {}]   ;;  %s4424_s1 = inlined_call_operand.hbm [shape: f32[2,1,32], index: 1, kind: input, shape index: {}]   ;;  %s4425_s2 = inlined_call_operand.vmem [shape: f32[2,1,32], index: 2, kind: input, shape index: {}]   ;;  %s4426_s3 = inlined_call_operand.vmem [shape: bf16[2,32,32], index: 3, kind: input, shape index: {}]   ;;  %s4427_s4 = inlined_call_operand.vmem [shape: bf16[2,32,32], index: 4, kind: input, shape index: {}]   ;;  %s4428_s5 = inlined_call_operand.vmem [shape: bf16[2,32,32], index: 5, kind: input, shape index: {}]   ;;  %s4429_s6 = inlined_call_operand.hbm [shape: bf16[2,32,32], index: 6, kind: input, shape index: {}]   ;;  %s4430_s7 = inlined_call_operand.vmem [shape: f32[2,1,32], index: 7, kind: input, shape index: {}]   ;;  %s4431_s8 = inlined_call_operand.vmem [shape: f32[2,1,32], index: 8, kind: input, shape index: {}]   ;;  %s4432_s9 = inlined_call_operand.vmem [shape: f32[2,1,32], index: 9, kind: input, shape index: {}]   ;;  %s4433_s10 = inlined_call_operand.hbm [shape: bf16[2,32,64], index: 10, kind: input, shape index: {}]   ;;  %s4434_s11 = inlined_call_operand.vmem [shape: f32[2,1,64], index: 11, kind: input, shape index: {}]   ;;  %s4435_s12 = inlined_call_operand.vmem [shape: bf16[2,64,32], index: 12, kind: input, shape index: {}]   ;;  %s4436_s13 = inlined_call_operand.vmem [shape: f32[2,1,32], index: 13, kind: input, shape index: {}]   ;;  %s4437_s14 = inlined_call_operand.hbm [shape: f32[2,8,32], index: 14, kind: output, shape index: {}]  }
   0x1   :  { %4439 = sst [smem:[#allocation15_spill]] %s4424_s1 }
   0x2   :  { %19 = vsyncpa [#allocation3], 0 }
   0x3   :  { %20 = vsyncpa [#allocation6], 0 }
   0x4   :  { %21 = vsyncpa [#allocation9], 0 }
   0x5   :  { %22 = vsyncpa [#allocation4], 0  ;;  %s3859_s29 = smov 0   ;;  %s3861_s30 = smov 0  }
   0x6   :  { %s3863_s15 = smov 0  }
   0x7 LB: > { %s3761_s16 = smov [#allocation5]   ;;  %s4438_s18 = sadd.s32 4294967295, %s3759_s15   ;;  %s3759_s15 = sphi %s3863_s15, %s28_s15   ;;  %s3755_s30 = sphi %s3861_s30, %s4448_s30   ;;  %s3751_s29 = sphi %s3859_s29, %s4447_s29  }
   0x8   : > { %s398_s17 = sshll.u32 %s3761_s16, 4  ;;  %p3144_p0 = scmp.ge.s32.totalorder %s3759_s15, 1  ;;  %s399_s17 = int_to_ptr.vmem [resolvable:$true] %s398_s17 }
   0x9   : > { %p370_p1 = scmp.lt.s32.totalorder %s3759_s15, 3  ;;  %p3879_p2 = scmp.eq.s32.totalorder %s4438_s18, 0 }
   0xa   : > { %s37_s22 = sadd.s32 1, %s3755_s30  ;;  %s3762_s24 = smov [#allocation2]  }
   0xb   : > { %p3883_p3 = pnand %p3144_p0, %p370_p1  ;;  %p3896_p6 = scmp.ge.s32.totalorder %s37_s22, 2 }
   0xc   : > { %s385_s25 = sshll.u32 %s3762_s24, 4  ;;  %s3604_s26 = scalar_lea.vmem %s399_s17, 32  ;;  %s386_s25 = int_to_ptr.vmem [resolvable:$true] %s385_s25 }
   0xd   : > { %p3452_p4 = pneg %p3883_p3  ;;  %p3605_p8 = scmp.ne.s32.totalorder %s399_s17, %s3604_s26 }
   0xe   : > { %p3612_p11 = scmp.lt.s32.totalorder %s399_s17, %s399_s17  ;;  %p3613_p12 = scmp.lt.s32.totalorder %s3604_s26, %s3604_s26 }
   0xf   : > { %p3891_p5 = pnand %p3879_p2, %p3452_p4 }
  0x10   : > { %p3614_p13 = por %p3613_p12, %p3612_p11 }
  0x11   : > { %p3595_p7 = pneg %p3891_p5 }
  0x13   : > { %p3607_p9 = pnand %p3605_p8, %p3595_p7 }
  0x15   : > { %p3608_p10 = pneg %p3607_p9 }
  0x17   : > { %p3615_p0 = pnand %p3614_p13, %p3608_p10 }
  0x19   : > { %3618 = shalt.err (!%p3615_p0)
}
  0x1a   : > { %s3763_s27 = smov 16   ;;  %s3764_s28 = smov 1  }
  0x1b   : > { %s4444_s1 = sld [smem:[#allocation15_spill]]  ;;  %s4450_s22 = smov (%p3896_p6, %s37_s22), 0 }
  0x1c   : > { %s3630_s18 = scalar_lea.vmem %s386_s25, 256  ;;  %p3638_p9 = scmp.lt.s32.totalorder %s386_s25, %s386_s25 }
  0x1d   : > { %p3631_p1 = scmp.ne.s32.totalorder %s386_s25, %s3630_s18  ;;  %p3639_p10 = scmp.lt.s32.totalorder %s3630_s18, %s3630_s18 }
  0x1f   : > { %p3633_p4 = pnand %p3631_p1, %p3595_p7  ;;  %p3640_p11 = por %p3639_p10, %p3638_p9 }
  0x21   : > { %3458 = dma.hbm_to_vmem [thread:$0]  (!%p3891_p5), %s4444_s1, 32, %s399_s17, [#allocation6], %s3763_s27, %s3763_s27, %s3764_s28  }
  0x22   : > { %p3634_p8 = pneg %p3633_p4 }
  0x24   : > { %p3641_p12 = pnand %p3640_p11, %p3634_p8 }
  0x26   : > { %3644 = shalt.err (!%p3641_p12)
}
  0x27   : > { %s3765_s26 = smov 128   ;;  %s3766_s16 = smov 8  }
  0x28   : > { %3455 = dma.hbm_to_vmem [thread:$0]  (!%p3891_p5), %s4423_s0, 256, %s386_s25, [#allocation3], %s3765_s26, %s3765_s26, %s3766_s16  }
  0x29   : > { %s3767_s27 = smov [#allocation7]  }
  0x2a   : > { %s423_s28 = sshll.u32 %s3767_s27, 4  ;;  %s424_s28 = int_to_ptr.vmem [resolvable:$true] %s423_s28 }
  0x2b   : > { %s3656_s24 = scalar_lea.vmem %s424_s28, 512  ;;  %p3664_p1 = scmp.lt.s32.totalorder %s424_s28, %s424_s28 }
  0x2c   : > { %p3657_p6 = scmp.ne.s32.totalorder %s424_s28, %s3656_s24  ;;  %p3665_p4 = scmp.lt.s32.totalorder %s3656_s24, %s3656_s24 }
  0x2e   : > { %p3659_p13 = pnand %p3657_p6, %p3595_p7  ;;  %p3666_p8 = por %p3665_p4, %p3664_p1 }
  0x30   : > { %p3660_p0 = pneg %p3659_p13 }
  0x32   : > { %p3667_p9 = pnand %p3666_p8, %p3660_p0 }
  0x34   : > { %3670 = shalt.err (!%p3667_p9)
}
  0x35   : > { %s3768_s18 = smov 64   ;;  %s3769_s1 = smov 4  }
  0x36   : > { %3461 = dma.hbm_to_vmem [thread:$0]  (!%p3891_p5), %s4429_s6, 512, %s424_s28, [#allocation6], %s3768_s18, %s3768_s18, %s3769_s1  }
  0x37   : > { %s3770_s16 = smov [#allocation8]  }
  0x38   : > { %s445_s17 = sshll.u32 %s3770_s16, 4  ;;  %s446_s17 = int_to_ptr.vmem [resolvable:$true] %s445_s17 }
  0x39   : > { %s3682_s23 = scalar_lea.vmem %s446_s17, 512  ;;  %p3690_p6 = scmp.lt.s32.totalorder %s446_s17, %s446_s17 }
  0x3a   : > { %p3683_p10 = scmp.ne.s32.totalorder %s446_s17, %s3682_s23  ;;  %p3691_p13 = scmp.lt.s32.totalorder %s3682_s23, %s3682_s23 }
  0x3c   : > { %p3685_p11 = pnand %p3683_p10, %p3595_p7  ;;  %p3692_p0 = por %p3691_p13, %p3690_p6 }
  0x3e   : > { %p3686_p12 = pneg %p3685_p11 }
  0x40   : > { %p3693_p1 = pnand %p3692_p0, %p3686_p12 }
  0x42   : > { %3696 = shalt.err (!%p3693_p1)
}
  0x43   : > { %3464 = dma.hbm_to_vmem [thread:$0]  (!%p3891_p5), %s4433_s10, 512, %s446_s17, [#allocation9], %s3768_s18, %s3768_s18, %s3769_s1  }
  0x44   : > { %470 = sbr.rel (%p3883_p3) target bundleno = 2595 (0xa23), region = 76 }
  0x49   : > { %3734 = dma.done.wait (%p3879_p2), [#allocation3], 256  }
  0x4a   : > { %3736 = vsyncadd (%p3879_p2), [#allocation3], 4294967040 }
  0x4b   : > { %3738 = dma.done.wait (%p3879_p2), [#allocation6], 544  }
  0x4c   : > { %3740 = vsyncadd (%p3879_p2), [#allocation6], 4294966752 }
  0x4d   : > { %3742 = dma.done.wait (%p3879_p2), [#allocation9], 512  }
  0x4e   : > { %3744 = vsyncadd (%p3879_p2), [#allocation9], 4294966784  ;;  %p3154_p3 = scmp.ne.s32.totalorder %s3751_s29, 0 }
  0x50   : > { %524 = sbr.rel (%p3154_p3) target bundleno = 87 (0x57), region = 96 }
  0x55   : > { %v525_v0 = vld [vmem:[#allocation2] sm:$0xff]  ;;  %vm527_vm0 = vcmask 261120   ;;  %v526_v1 = vld [vmem:[#allocation2 + $0x8] sm:$0xff] }
  0x56   : > { %528 = vst.msk [vmem:[#allocation10] sm:$0xff] %vm527_vm0, %v525_v0  ;;  %529 = vst.msk [vmem:[#allocation10 + $0x8] sm:$0xff] %vm527_vm0, %v526_v1 }
  0x57 PF: > { %vm536_vm1 = vcmask 261120   ;;  %s3958_s1 = sshll.u32 %s3751_s29, 4  ;;  %v3771_v16 = vmov 0.0   ;;  %vm3772_vm2 = vmmov 0   ;;  %s532_s23 = scalar_lea.vmem [#allocation5], %s3751_s29  ;;  %v796_v57 = vlaneseq }
  0x58   : > { %3284 = vmatprep.subr.bf16.mxu0 %v3771_v16  ;;  %3292 = vmatprep.subr.bf16.mxu1 %v3771_v16  ;;  %s583_s21 = scalar_lea.vmem %s4426_s3, %s3958_s1  ;;  %s645_s25 = scalar_lea.vmem %s4427_s4, %s3958_s1  ;;  %v3155_v29 = vld [vmem:[%s532_s23] ss:$0 sm:$0xff]  ;;  %v3776_v55 = vmov 1983009808   ;;  %v3777_v60 = vmov 1934713408  }
  0x59   : > { %v3537_v17 = vld [vmem:[%s583_s21 + $0x8] sm:$0xff]   ;;  %3288 = vmatprep.mubr.msk.bf16.mxu0 %vm3772_vm2, %v3771_v16  ;;  %3296 = vmatprep.mubr.msk.bf16.mxu1 %vm3772_vm2, %v3771_v16  ;;  %v3539_v19 = vld [vmem:[%s583_s21] sm:$0xff]   ;;  %s704_s17 = scalar_lea.vmem %s4428_s5, %s3958_s1  ;;  %s534_s19 = scalar_lea.vmem %s4425_s2, %s3751_s29  ;;  %v794_v56 = vunpack.c.l.s4 %v3776_v55  ;;  %v797_v59 = vshrl.u32 %v796_v57, 7  ;;  %v825_v61 = vunpack.c.l.s4 %v3777_v60  ;;  %v3778_v63 = vmov 0  }
  0x5a   : > { %v3538_v18 = vld [vmem:[%s645_s25 + $0x8] sm:$0xff]   ;;  %3285 = vmatpush3.bf16.msra.mxu0 %v3537_v17  ;;  %v3540_v20 = vld [vmem:[%s645_s25] sm:$0xff]   ;;  %s3773_s20 = smov 112   ;;  %s3774_s21 = smov 120   ;;  %v4013_v0 = vpack.i.b16 %v3778_v63, %v3778_v63  ;;  %vm1608_vm3 = vcmask 64512   ;;  %vm2076_vm4 = vcmask 1043456  }
  0x5b   : > { %3293 = vmatpush3.bf16.msra.mxu1 %v3538_v18  ;;  %3286 = vmatprep.subr.bf16.mxu0 %v3771_v16  ;;  %v3156_v33 = vld [vmem:[%s534_s19] ss:$0 sm:$0xff]  ;;  %v3541_v37 = vld [vmem:[%s704_s17 + $0x8] sm:$0xff]   ;;  %s3775_s28 = smov 104   ;;  %v795_v58 = vunpack.c.0.s8 %v794_v56  ;;  %s2748_s18 = scalar_lea.vmem [#allocation7], %s3958_s1  ;;  %vm2740_vm5 = vcmask 130048  }
  0x5c   : > { %3294 = vmatprep.subr.bf16.mxu1 %v3771_v16  ;;  %v3542_v39 = vld [vmem:[%s704_s17] sm:$0xff]   ;;  %s3779_s25 = smov 16   ;;  %s3780_s26 = smov 8   ;;  %vm2743_vm6 = vcmask 195584   ;;  %vm2982_vm7 = vcmask 523264  }
  0x5d   : > { %v530_v2 = vld [vmem:[#allocation10] sm:$0xff]  ;;  %v531_v3 = vld [vmem:[#allocation10 + $0x8] sm:$0xff]  ;;  %s3781_s16 = smov 24   ;;  %s2753_s27 = scalar_lea.vmem %s4430_s7, %s3751_s29 }
  0x5e   : > { %v537_v4 = vsel %vm536_vm1, %v530_v2, 0.0  ;;  %v540_v5 = vsel %vm536_vm1, %v531_v3, 0.0  ;;  %3287 = vmatpush3.bf16.msra.mxu0 %v3539_v19  ;;  %s2867_s24 = scalar_lea.vmem [#allocation8], %s3958_s1  ;;  %s3231_s19 = sshll.u32 %s3751_s29, 5 }
  0x5f   : > { %538 = vadd.xlane.f32.xlu0 %v537_v4  ;;  %3295 = vmatpush3.bf16.msra.mxu1 %v3540_v20  ;;  %v4015_v4 = vsub.s32 %v795_v58, %v797_v59  ;;  %s2821_s23 = scalar_lea.vmem %s4432_s9, %s3751_s29  ;;  %s3782_s1 = smov [#allocation10]  }
  0x60   : > { %3300 = vmatprep.subr.bf16.mxu0 %v3771_v16  ;;  %3308 = vmatprep.subr.bf16.mxu1 %v3771_v16 }
  0x63   : > { %541 = vadd.xlane.f32.xlu0 %v540_v5 }
  0xe8   : > { %v539_v6 = vpop.xlane.xlu0 %538 }
  0xe9   : > { %v544_v7 = vmul.f32 0.03125, %v539_v6  ;;  %v826_v6 = vunpack.c.0.s8 %v825_v61 }
  0xeb   : > { %v546_v8 = vsub.f32 %v530_v2, %v544_v7 }
  0xec   : > { %v542_v9 = vpop.xlane.xlu0 %541 }
  0xed   : > { %v545_v10 = vmul.f32 0.03125, %v542_v9  ;;  %v548_v11 = vmul.f32 %v546_v8, %v546_v8 }
  0xef   : > { %v547_v12 = vsub.f32 %v531_v3, %v545_v10  ;;  %v550_v13 = vsel %vm536_vm1, %v548_v11, 0.0 }
  0xf0   : > { %551 = vadd.xlane.f32.xlu1 %v550_v13 }
  0xf1   : > { %v549_v14 = vmul.f32 %v547_v12, %v547_v12 }
  0xf3   : > { %v553_v15 = vsel %vm536_vm1, %v549_v14, 0.0  ;;  %v4019_v14 = vsub.s32 %v826_v6, %v797_v59 }
  0xf4   : > { %554 = vadd.xlane.f32.xlu1 %v553_v15 }
 0x179   : > { %v552_v21 = vpop.xlane.xlu1 %551 }
 0x17a   : > { %v556_v22 = vmul.f32 0.03125, %v552_v21 }
 0x17c   : > { %v558_v23 = vadd.f32 1e-05, %v556_v22 }
 0x17d   : > { %v555_v24 = vpop.xlane.xlu1 %554 }
 0x17e   : > { %3551 = vrsqrt.f32 %v558_v23  ;;  %v557_v25 = vmul.f32 0.03125, %v555_v24 }
 0x180   : > { %v559_v26 = vadd.f32 1e-05, %v557_v25 }
 0x182   : > { %3553 = vrsqrt.f32 %v559_v26 }
 0x18b   : > { %v3552_v27 = vpop.eup %3551 }
 0x18c   : > { %v562_v28 = vmul.f32 %v3552_v27, %v546_v8 }
 0x18e   : > { %v570_v32 = vmul.f32 %v3155_v29, %v562_v28 }
 0x18f   : > { %v3554_v30 = vpop.eup %3553 }
 0x190   : > { %v563_v31 = vmul.f32 %v3554_v30, %v547_v12  ;;  %v578_v35 = vadd.f32 %v3156_v33, %v570_v32 }
 0x192   : > { %v571_v34 = vmul.f32 %v3155_v29, %v563_v31 }
 0x194   : > { %v579_v36 = vadd.f32 %v3156_v33, %v571_v34 }
 0x196   : > { %v580_v38 = vpack.c.bf16 %v579_v36, %v578_v35 }
 0x198   : > { %3289 = vmatmul.mubr.msk.bf16.vlgmr.msra.gmra.mxu0 %vm536_vm1, %v580_v38  ;;  %3297 = vmatmul.mubr.msk.bf16.vlgmr.msra.gmra.mxu1 %vm536_vm1, %v580_v38 }
 0x199   : > { %3301 = vmatpush3.bf16.msra.mxu0 %v3541_v37  ;;  %3304 = vmatprep.mubr.msk.bf16.mxu0 %vm3772_vm2, %v3771_v16 }
 0x19a   : > { %3302 = vmatprep.subr.bf16.mxu0 %v3771_v16  ;;  %3310 = vmatprep.mubr.msk.bf16.mxu1 %vm3772_vm2, %v3771_v16 }
 0x19d   : > { %3303 = vmatpush3.bf16.msra.mxu0 %v3542_v39 }
 0x19e   : > { %3314 = vmatprep.subr.bf16.mxu0 %v3771_v16 }
 0x1a0   : > { %3305 = vmatmul.mubr.msk.bf16.vlgmr.msra.gmra.mxu0 %vm536_vm1, %v580_v38 }
 0x1a1   : > { %3316 = vmatprep.mubr.msk.bf16.mxu0 %vm3772_vm2, %v3771_v16 }
 0x258   : > { %v637_v40 = vpop.f32.mrf.mxu0  ;;  %v696_v41 = vpop.f32.mrf.mxu1 }
 0x25a   : > { %v3290_v42 = vpop.f32.mrf.mxu0  ;;  %v3298_v43 = vpop.f32.mrf.mxu1 }
 0x25c   : > { %v640_v44 = vpop.f32.mrf.mxu0  ;;  %v699_v45 = vpop.f32.mrf.mxu1 }
 0x25d   : > { %v1048_v46 = vpack.c.bf16 %v699_v45, %v696_v41  ;;  %v4000_v50 = vpack.c.bf16 %v640_v44, %v637_v40 }
 0x25e   : > { %v3291_v47 = vpop.f32.mrf.mxu0  ;;  %v3299_v48 = vpop.f32.mrf.mxu1 }
 0x25f   : > { %1052 = vrot.lane.b32.xlu1 %v1048_v46, %s3773_s20  ;;  %1050 = vrot.lane.b32.xlu0 %v1048_v46, %s3774_s21  ;;  %v1060_v5 = vshrl.u32 %v1048_v46, 16 }
 0x260   : > { %v755_v49 = vpop.f32.mrf.mxu0 }
 0x262   : > { %v3306_v51 = vpop.f32.mrf.mxu0 }
 0x263   : > { %1054 = vrot.lane.b32.xlu1 %v1048_v46, %s3775_s28  ;;  %766 = vrot.lane.b32.xlu0 %v4000_v50, %s3773_s20 }
 0x264   : > { %v758_v52 = vpop.f32.mrf.mxu0 }
 0x265   : > { %v4005_v53 = vpack.c.bf16 %v758_v52, %v755_v49  ;;  %v774_v52 = vshrl.u32 %v4000_v50, 16 }
 0x266   : > { %v3307_v54 = vpop.f32.mrf.mxu0 }
 0x267   : > { %764 = vrot.lane.b32.xlu1 %v4000_v50, %s3774_s21 }
 0x26b   : > { %768 = vrot.lane.b32.xlu1 %v4000_v50, %s3775_s28 }
 0x2d1   : > { %v1053_v62 = vpop.permute.xlu1 %1052  ;;  %v1051_v1 = vpop.permute.xlu0 %1050 }
 0x2d2   : > { %v1058_v2 = vpack.i.b16 %v1051_v1, %v1048_v46  ;;  %v1061_v3 = vshrl.u32 %v1051_v1, 16  ;;  %v1068_v11 = vshrl.u32 %v1053_v62, 16 }
 0x2d4   : > { %v1072_v7 = vcombine.high %v1058_v2, %v4013_v0  ;;  %v1062_v9 = vpack.i.b16 %v1061_v3, %v1060_v5  ;;  %v1079_v13 = vrot.slane %v1058_v2, %v4015_v4 }
 0x2d5   : > { %v1055_v8 = vpop.permute.xlu1 %1054  ;;  %v767_v43 = vpop.permute.xlu0 %766 }
 0x2d6   : > { %v1066_v10 = vpack.i.b16 %v1055_v8, %v1053_v62  ;;  %v1069_v12 = vshrl.u32 %v1055_v8, 16  ;;  %v1086_v18 = vrot.slane %v1072_v7, %v4015_v4  ;;  %v1138_v20 = vcombine.high %v1062_v9, %v4013_v0 }
 0x2d7   : > { %v1145_v24 = vrot.slane %v1062_v9, %v4015_v4  ;;  %v782_v57 = vshrl.u32 %v767_v43, 16 }
 0x2d8   : > { %v1087_v15 = vcombine.high %v1066_v10, %v4013_v0  ;;  %v1094_v17 = vrot.slane %v1066_v10, %v4015_v4  ;;  %v1070_v19 = vpack.i.b16 %v1069_v12, %v1068_v11  ;;  %v1152_v35 = vrot.slane %v1138_v20, %v4015_v4 }
 0x2d9   : > { %v765_v27 = vpop.permute.xlu1 %764 }
 0x2da   : > { %v1101_v21 = vrot.slane %v1087_v15, %v4015_v4  ;;  %v1102_v22 = vcombine.low %v1079_v13, %v1094_v17  ;;  %v1103_v23 = vcombine.high %v1079_v13, %v1094_v17  ;;  %v1153_v25 = vcombine.high %v1070_v19, %v4013_v0 }
 0x2db   : > { %v1160_v26 = vrot.slane %v1070_v19, %v4015_v4  ;;  %v775_v44 = vshrl.u32 %v765_v27, 16  ;;  %v772_v51 = vpack.i.b16 %v765_v27, %v4000_v50 }
 0x2dc   : > { %v1110_v28 = vrot.slane %v1102_v22, %v4019_v14  ;;  %v1117_v29 = vrot.slane %v1103_v23, %v4019_v14  ;;  %v1118_v30 = vcombine.low %v1086_v18, %v1101_v21  ;;  %v1119_v31 = vcombine.high %v1086_v18, %v1101_v21 }
 0x2dd   : > { %v1167_v32 = vrot.slane %v1153_v25, %v4015_v4  ;;  %v1168_v33 = vcombine.low %v1145_v24, %v1160_v26  ;;  %v1169_v34 = vcombine.high %v1145_v24, %v1160_v26  ;;  %v769_v49 = vpop.permute.xlu1 %768  ;;  %v776_v60 = vpack.i.b16 %v775_v44, %v774_v52 }
 0x2de   : > { %v1204_v36 = vcombine.low %v1110_v28, %v1117_v29  ;;  %v3174_v37 = vcombine.high %v1110_v28, %v1117_v29  ;;  %v4036_v40 = vrot.slane %v1118_v30, %v4019_v14  ;;  %v4039_v41 = vrot.slane %v1119_v31, %v4019_v14 }
 0x2df   : > { %v1176_v38 = vrot.slane %v1168_v33, %v4019_v14  ;;  %v1183_v39 = vrot.slane %v1169_v34, %v4019_v14  ;;  %v1184_v42 = vcombine.low %v1152_v35, %v1167_v32  ;;  %v1185_v54 = vcombine.high %v1152_v35, %v1167_v32 }
 0x2e0   : > { %v1211_v45 = vrot.slane %v1204_v36, %v4015_v4  ;;  %v1219_v46 = vrot.slane %v3174_v37, %v4015_v4  ;;  %v1254_v58 = vcombine.low %v4036_v40, %v4039_v41  ;;  %v3176_v59 = vcombine.high %v4036_v40, %v4039_v41 }
 0x2e1   : > { %v1229_v47 = vcombine.low %v1176_v38, %v1183_v39  ;;  %v3175_v48 = vcombine.high %v1176_v38, %v1183_v39  ;;  %v780_v61 = vpack.i.b16 %v769_v49, %v767_v43  ;;  %v1192_v62 = vrot.slane %v1184_v42, %v4019_v14 }
 0x2e2   : > { %v783_v1 = vshrl.u32 %v769_v49, 16  ;;  %v1220_v2 = vcombine.low %v1211_v45, %v1219_v46  ;;  %v792_v3 = vcombine.high %v772_v51, %v4013_v0  ;;  %v799_v5 = vrot.slane %v772_v51, %v4015_v4 }
 0x2e3   : > { %v1236_v55 = vrot.slane %v1229_v47, %v4015_v4  ;;  %v1244_v56 = vrot.slane %v3175_v48, %v4015_v4  ;;  %v807_v6 = vcombine.high %v780_v61, %v4013_v0  ;;  %v814_v7 = vrot.slane %v780_v61, %v4015_v4 }
 0x2e4   : > { %v1199_v8 = vrot.slane %v1185_v54, %v4019_v14  ;;  %v784_v9 = vpack.i.b16 %v783_v1, %v782_v57  ;;  %v1227_v10 = vrot.slane %v1220_v2, %v4019_v14  ;;  %v858_v12 = vcombine.high %v776_v60, %v4013_v0 }
 0x2e5   : > { %v1245_v50 = vcombine.low %v1236_v55, %v1244_v56  ;;  %v865_v13 = vrot.slane %v776_v60, %v4015_v4  ;;  %v822_v15 = vcombine.low %v799_v5, %v814_v7  ;;  %v823_v17 = vcombine.high %v799_v5, %v814_v7 }
 0x2e6   : > { %v821_v18 = vrot.slane %v807_v6, %v4015_v4  ;;  %v873_v19 = vcombine.high %v784_v9, %v4013_v0  ;;  %v880_v20 = vrot.slane %v784_v9, %v4015_v4  ;;  %v4065_v22 = vrot.slane %v1254_v58, %v4015_v4 }
 0x2e7   : > { %v1252_v11 = vrot.slane %v1245_v50, %v4019_v14  ;;  %v806_v23 = vrot.slane %v792_v3, %v4015_v4  ;;  %v830_v24 = vrot.slane %v822_v15, %v4019_v14  ;;  %v837_v25 = vrot.slane %v823_v17, %v4019_v14 }
 0x2e8   : > { %v887_v26 = vrot.slane %v873_v19, %v4015_v4  ;;  %v888_v27 = vcombine.low %v865_v13, %v880_v20  ;;  %v889_v28 = vcombine.high %v865_v13, %v880_v20  ;;  %v1279_v30 = vcombine.low %v1192_v62, %v1199_v8 }
 0x2e9   : > { %v1306_v21 = vpack.i.b16 %v1252_v11, %v1227_v10  ;;  %v872_v31 = vrot.slane %v858_v12, %v4015_v4  ;;  %v924_v32 = vcombine.low %v830_v24, %v837_v25  ;;  %v3170_v33 = vcombine.high %v830_v24, %v837_v25 }
 0x2ea   : > { %v3177_v34 = vcombine.high %v1192_v62, %v1199_v8  ;;  %v838_v35 = vcombine.low %v806_v23, %v821_v18  ;;  %v896_v36 = vrot.slane %v888_v27, %v4019_v14  ;;  %v903_v37 = vrot.slane %v889_v28, %v4019_v14 }
 0x2eb   : > { %v1613_v29 = vsel %vm1608_vm3, %v1306_v21, 0  ;;  %v904_v38 = vcombine.low %v872_v31, %v887_v26  ;;  %v905_v39 = vcombine.high %v872_v31, %v887_v26  ;;  %v931_v40 = vrot.slane %v924_v32, %v4015_v4 }
 0x2ec   : > { %3309 = vmatpush3.bf16.xpose.msra.mxu1 %v1613_v29  ;;  %v939_v41 = vrot.slane %v3170_v33, %v4015_v4  ;;  %v1269_v42 = vrot.slane %v3176_v59, %v4015_v4  ;;  %v839_v43 = vcombine.high %v806_v23, %v821_v18  ;;  %v949_v44 = vcombine.low %v896_v36, %v903_v37 }
 0x2ed   : > { %3320 = vmatprep.subr.bf16.mxu1 %v3771_v16  ;;  %v3171_v45 = vcombine.high %v896_v36, %v903_v37  ;;  %v1307_v47 = vshrl.u32 %v1227_v10, 16  ;;  %v1308_v48 = vshrl.u32 %v1252_v11, 16  ;;  %v1286_v49 = vrot.slane %v1279_v30, %v4015_v4 }
 0x2ee   : > { %v940_v46 = vcombine.low %v931_v40, %v939_v41  ;;  %v846_v51 = vrot.slane %v838_v35, %v4019_v14  ;;  %v956_v52 = vrot.slane %v949_v44, %v4015_v4  ;;  %v1294_v55 = vrot.slane %v3177_v34, %v4015_v4 }
 0x2ef   : > { %v964_v54 = vrot.slane %v3171_v45, %v4015_v4  ;;  %v912_v56 = vrot.slane %v904_v38, %v4019_v14  ;;  %v919_v57 = vrot.slane %v905_v39, %v4019_v14  ;;  %v1309_v58 = vpack.i.b16 %v1308_v48, %v1307_v47 }
 0x2f0   : > { %v1228_v59 = vcombine.high %v1227_v10, %v3778_v63  ;;  %v853_v60 = vrot.slane %v839_v43, %v4019_v14  ;;  %v947_v61 = vrot.slane %v940_v46, %v4019_v14  ;;  %v1253_v1 = vcombine.high %v1252_v11, %v3778_v63 }
 0x2f1   : > { %v965_v62 = vcombine.low %v956_v52, %v964_v54  ;;  %v1659_v2 = vsel %vm1608_vm3, %v1309_v58, 0  ;;  %v1270_v6 = vcombine.low %v4065_v22, %v1269_v42  ;;  %v999_v7 = vcombine.low %v912_v56, %v919_v57 }
 0x2f2   : > { %3315 = vmatpush3.bf16.xpose.msra.mxu0 %v1659_v2  ;;  %v1312_v3 = vpack.i.b16 %v1253_v1, %v1228_v59  ;;  %v1314_v5 = vshrl.u32 %v1253_v1, 16  ;;  %v3173_v8 = vcombine.high %v912_v56, %v919_v57  ;;  %v1313_v9 = vshrl.u32 %v1228_v59, 16 }
 0x2f3   : > { %v972_v50 = vrot.slane %v965_v62, %v4019_v14  ;;  %3326 = vmatprep.subr.bf16.mxu0 %v3771_v16  ;;  %v1295_v10 = vcombine.low %v1286_v49, %v1294_v55  ;;  %v974_v12 = vcombine.low %v846_v51, %v853_v60  ;;  %v1027_v15 = vshrl.u32 %v947_v61, 16 }
 0x2f4   : > { %v3172_v11 = vcombine.high %v846_v51, %v853_v60  ;;  %v1315_v18 = vpack.i.b16 %v1314_v5, %v1313_v9  ;;  %v1705_v20 = vsel %vm1608_vm3, %v1312_v3, 0  ;;  %v1277_v22 = vrot.slane %v1270_v6, %v4019_v14 }
 0x2f5   : > { %v1026_v13 = vpack.i.b16 %v972_v50, %v947_v61  ;;  %v1028_v17 = vshrl.u32 %v972_v50, 16  ;;  %v1302_v19 = vrot.slane %v1295_v10, %v4019_v14  ;;  %v1006_v23 = vrot.slane %v999_v7, %v4015_v4 }
 0x2f6   : > { %v1014_v24 = vrot.slane %v3173_v8, %v4015_v4  ;;  %v973_v25 = vcombine.high %v972_v50, %v3778_v63  ;;  %v981_v26 = vrot.slane %v974_v12, %v4015_v4  ;;  %v989_v27 = vrot.slane %v3172_v11, %v4015_v4 }
 0x2f7   : > { %3311 = vmatmul.mubr.msk.bf16.vlgmr.msra.gmra.mxu1 %vm1608_vm3, %v1026_v13  ;;  %v1029_v21 = vpack.i.b16 %v1028_v17, %v1027_v15  ;;  %v1751_v28 = vsel %vm1608_vm3, %v1315_v18, 0  ;;  %v948_v29 = vcombine.high %v947_v61, %v3778_v63  ;;  %v1320_v30 = vshrl.u32 %v1302_v19, 16 }
 0x2f8   : > { %3321 = vmatpush3.bf16.xpose.msra.mxu1 %v1705_v20  ;;  %3322 = vmatprep.mubr.msk.bf16.mxu1 %vm3772_vm2, %v3771_v16  ;;  %v1318_v31 = vpack.i.b16 %v1302_v19, %v1277_v22  ;;  %v1015_v32 = vcombine.low %v1006_v23, %v1014_v24  ;;  %v1034_v33 = vshrl.u32 %v973_v25, 16  ;;  %v1319_v34 = vshrl.u32 %v1277_v22, 16 }
 0x2f9   : > { %3332 = vmatprep.subr.bf16.mxu1 %v3771_v16  ;;  %3317 = vmatmul.mubr.msk.bf16.vlgmr.msra.gmra.mxu0 %vm1608_vm3, %v1029_v21  ;;  %v1032_v35 = vpack.i.b16 %v973_v25, %v948_v29  ;;  %v990_v36 = vcombine.low %v981_v26, %v989_v27  ;;  %v1033_v37 = vshrl.u32 %v948_v29, 16  ;;  %v1303_v39 = vcombine.high %v1302_v19, %v3778_v63 }
 0x2fa   : > { %3327 = vmatpush3.bf16.xpose.msra.mxu0 %v1751_v28  ;;  %3328 = vmatprep.mubr.msk.bf16.mxu0 %vm3772_vm2, %v3771_v16  ;;  %v1321_v38 = vpack.i.b16 %v1320_v30, %v1319_v34  ;;  %v1797_v40 = vsel %vm1608_vm3, %v1318_v31, 0  ;;  %v1022_v42 = vrot.slane %v1015_v32, %v4019_v14  ;;  %v1278_v43 = vcombine.high %v1277_v22, %v3778_v63 }
 0x2fb   : > { %3338 = vmatprep.subr.bf16.mxu0 %v3771_v16  ;;  %v1035_v41 = vpack.i.b16 %v1034_v33, %v1033_v37  ;;  %v997_v45 = vrot.slane %v990_v36, %v4019_v14  ;;  %v1326_v46 = vshrl.u32 %v1303_v39, 16 }
 0x2fc   : > { %v1843_v44 = vsel %vm1608_vm3, %v1321_v38, 0  ;;  %v1324_v47 = vpack.i.b16 %v1303_v39, %v1278_v43  ;;  %v1040_v48 = vshrl.u32 %v1022_v42, 16  ;;  %v1325_v49 = vshrl.u32 %v1278_v43, 16 }
 0x2fd   : > { %v1038_v51 = vpack.i.b16 %v1022_v42, %v997_v45  ;;  %v1039_v52 = vshrl.u32 %v997_v45, 16  ;;  %v1023_v57 = vcombine.high %v1022_v42, %v3778_v63  ;;  %v998_v59 = vcombine.high %v997_v45, %v3778_v63 }
 0x2fe   : > { %v1327_v54 = vpack.i.b16 %v1326_v46, %v1325_v49  ;;  %v1889_v55 = vsel %vm1608_vm3, %v1324_v47, 0 }
 0x2ff   : > { %3323 = vmatmul.mubr.msk.bf16.vlgmr.msra.gmra.mxu1 %vm1608_vm3, %v1032_v35  ;;  %v1041_v56 = vpack.i.b16 %v1040_v48, %v1039_v52  ;;  %v1046_v60 = vshrl.u32 %v1023_v57, 16  ;;  %v1044_v61 = vpack.i.b16 %v1023_v57, %v998_v59  ;;  %v1045_v62 = vshrl.u32 %v998_v59, 16 }
 0x300   : > { %3333 = vmatpush3.bf16.xpose.msra.mxu1 %v1797_v40  ;;  %3334 = vmatprep.mubr.msk.bf16.mxu1 %vm3772_vm2, %v3771_v16  ;;  %v1935_v58 = vsel %vm1608_vm3, %v1327_v54, 0 }
 0x301   : > { %3344 = vmatprep.subr.bf16.mxu1 %v3771_v16  ;;  %3329 = vmatmul.mubr.msk.bf16.vlgmr.msra.gmra.mxu0 %vm1608_vm3, %v1035_v41  ;;  %v1047_v1 = vpack.i.b16 %v1046_v60, %v1045_v62 }
 0x302   : > { %3339 = vmatpush3.bf16.xpose.msra.mxu0 %v1843_v44  ;;  %3340 = vmatprep.mubr.msk.bf16.mxu0 %vm3772_vm2, %v3771_v16 }
 0x303   : > { %3350 = vmatprep.subr.bf16.mxu0 %v3771_v16 }
 0x307   : > { %3335 = vmatmul.mubr.msk.bf16.vlgmr.msra.gmra.mxu1 %vm1608_vm3, %v1038_v51 }
 0x308   : > { %3345 = vmatpush3.bf16.xpose.msra.mxu1 %v1889_v55  ;;  %3346 = vmatprep.mubr.msk.bf16.mxu1 %vm3772_vm2, %v3771_v16 }
 0x309   : > { %3356 = vmatprep.subr.bf16.mxu1 %v3771_v16  ;;  %3341 = vmatmul.mubr.msk.bf16.vlgmr.msra.gmra.mxu0 %vm1608_vm3, %v1041_v56 }
 0x30a   : > { %3351 = vmatpush3.bf16.xpose.msra.mxu0 %v1935_v58  ;;  %3352 = vmatprep.mubr.msk.bf16.mxu0 %vm3772_vm2, %v3771_v16 }
 0x30b   : > { %3362 = vmatprep.subr.bf16.mxu0 %v3771_v16 }
 0x30f   : > { %3347 = vmatmul.mubr.msk.bf16.vlgmr.msra.gmra.mxu1 %vm1608_vm3, %v1044_v61 }
 0x310   : > { %3358 = vmatprep.mubr.msk.bf16.mxu1 %vm3772_vm2, %v3771_v16 }
 0x311   : > { %3353 = vmatmul.mubr.msk.bf16.vlgmr.msra.gmra.mxu0 %vm1608_vm3, %v1047_v1 }
 0x312   : > { %3364 = vmatprep.mubr.msk.bf16.mxu0 %vm3772_vm2, %v3771_v16 }
 0x3b7   : > { %v1649_v2 = vpop.f32.mrf.mxu1 }
 0x3b8   : > { %v1977_v50 = vsel %vm1608_vm3, %v1649_v2, -inf }
 0x3b9   : > { %1978 = vmax.xlane.f32.xlu0 %v1977_v50  ;;  %v3312_v3 = vpop.f32.mrf.mxu1  ;;  %v1695_v5 = vpop.f32.mrf.mxu0 }
 0x3ba   : > { %v1980_v7 = vsel %vm1608_vm3, %v1695_v5, -inf }
 0x3bb   : > { %v1652_v6 = vpop.f32.mrf.mxu1  ;;  %1981 = vmax.xlane.f32.xlu1 %v1980_v7  ;;  %v3318_v8 = vpop.f32.mrf.mxu0 }
 0x3bd   : > { %v3313_v9 = vpop.f32.mrf.mxu1  ;;  %v1698_v10 = vpop.f32.mrf.mxu0 }
 0x3bf   : > { %v4146_v12 = vpop.f32.mrf.mxu1  ;;  %v3319_v13 = vpop.f32.mrf.mxu0 }
 0x3c0   : > { %v1983_v15 = vsel %vm1608_vm3, %v4146_v12, -inf }
 0x3c1   : > { %1984 = vmax.xlane.f32.xlu0 %v1983_v15  ;;  %v3324_v17 = vpop.f32.mrf.mxu1  ;;  %v1787_v11 = vpop.f32.mrf.mxu0 }
 0x3c2   : > { %v1986_v20 = vsel %vm1608_vm3, %v1787_v11, -inf }
 0x3c3   : > { %v1744_v18 = vpop.f32.mrf.mxu1  ;;  %v3330_v19 = vpop.f32.mrf.mxu0 }
 0x3c5   : > { %v3325_v21 = vpop.f32.mrf.mxu1  ;;  %1987 = vmax.xlane.f32.xlu0 %v1986_v20  ;;  %v1790_v22 = vpop.f32.mrf.mxu0 }
 0x3c7   : > { %v1833_v23 = vpop.f32.mrf.mxu1  ;;  %v3331_v24 = vpop.f32.mrf.mxu0 }
 0x3c8   : > { %v1989_v25 = vsel %vm1608_vm3, %v1833_v23, -inf }
 0x3c9   : > { %v3336_v26 = vpop.f32.mrf.mxu1  ;;  %1990 = vmax.xlane.f32.xlu0 %v1989_v25  ;;  %v1879_v27 = vpop.f32.mrf.mxu0 }
 0x3ca   : > { %v1992_v29 = vsel %vm1608_vm3, %v1879_v27, -inf }
 0x3cb   : > { %v1836_v28 = vpop.f32.mrf.mxu1  ;;  %1993 = vmax.xlane.f32.xlu1 %v1992_v29  ;;  %v3342_v30 = vpop.f32.mrf.mxu0 }
 0x3cd   : > { %v3337_v31 = vpop.f32.mrf.mxu1  ;;  %v1882_v32 = vpop.f32.mrf.mxu0 }
 0x3ce   : > { %v1340_v32 = vshrl.u32 %v4005_v53, 16 }
 0x3cf   : > { %v1925_v33 = vpop.f32.mrf.mxu1  ;;  %v3343_v34 = vpop.f32.mrf.mxu0 }
 0x3d0   : > { %v1995_v35 = vsel %vm1608_vm3, %v1925_v33, -inf }
 0x3d1   : > { %v3348_v36 = vpop.f32.mrf.mxu1  ;;  %1996 = vmax.xlane.f32.xlu0 %v1995_v35  ;;  %v1971_v37 = vpop.f32.mrf.mxu0 }
 0x3d2   : > { %v1998_v39 = vsel %vm1608_vm3, %v1971_v37, -inf }
 0x3d3   : > { %v1928_v38 = vpop.f32.mrf.mxu1  ;;  %1999 = vmax.xlane.f32.xlu1 %v1998_v39  ;;  %v3354_v40 = vpop.f32.mrf.mxu0 }
 0x3d5   : > { %v3349_v41 = vpop.f32.mrf.mxu1  ;;  %v1974_v42 = vpop.f32.mrf.mxu0 }
 0x3d7   : > { %v3355_v43 = vpop.f32.mrf.mxu0 }
 0x3e4   : > { %1332 = vrot.lane.b32.xlu1 %v4005_v53, %s3773_s20 }
 0x442   : > { %v1979_v44 = vpop.xlane.xlu0 %1978 }
 0x443   : > { %v2001_v45 = vsub.f32 %v1649_v2, %v1979_v44 }
 0x444   : > { %v1982_v47 = vpop.xlane.xlu1 %1981 }
 0x445   : > { %v2009_v46 = vmul.f32 1.442695, %v2001_v45  ;;  %v2002_v48 = vsub.f32 %v1695_v5, %v1982_v47 }
 0x447   : > { %3555 = vpow2.f32 %v2009_v46  ;;  %v2011_v49 = vmul.f32 1.442695, %v2002_v48 }
 0x449   : > { %3557 = vpow2.f32 %v2011_v49 }
 0x44a   : > { %v1985_v56 = vpop.xlane.xlu0 %1984 }
 0x44b   : > { %v2003_v60 = vsub.f32 %v4146_v12, %v1985_v56 }
 0x44d   : > { %v2013_v50 = vmul.f32 1.442695, %v2003_v60 }
 0x44e   : > { %v1988_v57 = vpop.xlane.xlu0 %1987 }
 0x44f   : > { %v2004_v58 = vsub.f32 %v1787_v11, %v1988_v57 }
 0x451   : > { %v2015_v61 = vmul.f32 1.442695, %v2004_v58 }
 0x452   : > { %v1991_v59 = vpop.xlane.xlu0 %1990 }
 0x453   : > { %v2005_v62 = vsub.f32 %v1833_v23, %v1991_v59  ;;  %3559 = vpow2.f32 %v2015_v61 }
 0x454   : > { %v4157_v51 = vpop.eup %3555  ;;  %v1994_v2 = vpop.xlane.xlu1 %1993  ;;  %3561 = vpow2.f32 %v2013_v50 }
 0x455   : > { %v2025_v52 = vsel %vm1608_vm3, %v4157_v51, 0.0  ;;  %v2017_v5 = vmul.f32 1.442695, %v2005_v62  ;;  %v2006_v6 = vsub.f32 %v1879_v27, %v1994_v2 }
 0x456   : > { %2026 = vadd.xlane.f32.xlu0 %v2025_v52  ;;  %v4161_v54 = vpop.eup %3557 }
 0x457   : > { %v2028_v55 = vsel %vm1608_vm3, %v4161_v54, 0.0  ;;  %3563 = vpow2.f32 %v2017_v5  ;;  %v2019_v9 = vmul.f32 1.442695, %v2006_v6 }
 0x458   : > { %2029 = vadd.xlane.f32.xlu1 %v2028_v55 }
 0x45a   : > { %v1997_v1 = vpop.xlane.xlu0 %1996 }
 0x45b   : > { %v2007_v3 = vsub.f32 %v1925_v33, %v1997_v1 }
 0x45c   : > { %v2000_v7 = vpop.xlane.xlu1 %1999 }
 0x45d   : > { %v2021_v8 = vmul.f32 1.442695, %v2007_v3  ;;  %v2008_v10 = vsub.f32 %v1971_v37, %v2000_v7 }
 0x45f   : > { %3565 = vpow2.f32 %v2021_v8  ;;  %v2023_v13 = vmul.f32 1.442695, %v2008_v10 }
 0x460   : > { %3567 = vpow2.f32 %v2019_v9  ;;  %v4170_v12 = vpop.eup %3559  ;;  %v1333_v26 = vpop.permute.xlu1 %1332 }
 0x461   : > { %3569 = vpow2.f32 %v2023_v13  ;;  %v4172_v15 = vpop.eup %3561  ;;  %v2034_v17 = vsel %vm1608_vm3, %v4170_v12, 0.0  ;;  %v1348_v34 = vshrl.u32 %v1333_v26, 16 }
 0x462   : > { %v2031_v18 = vsel %vm1608_vm3, %v4172_v15, 0.0 }
 0x464   : > { %v4176_v11 = vpop.eup %3563 }
 0x465   : > { %v2037_v20 = vsel %vm1608_vm3, %v4176_v11, 0.0 }
 0x469   : > { %1334 = vrot.lane.b32.xlu1 %v4005_v53, %s3775_s28  ;;  %s4366_s28 = scalar_lea.vmem %s4435_s12, %s3231_s19  ;;  %s2872_s19 = scalar_lea.vmem %s4434_s11, %s3751_s29 }
 0x46c   : > { %1330 = vrot.lane.b32.xlu0 %v4005_v53, %s3774_s21  ;;  %v4180_v19 = vpop.eup %3565 }
 0x46d   : > { %v4184_v21 = vpop.eup %3567  ;;  %v2043_v22 = vsel %vm1608_vm3, %v4180_v19, 0.0 }
 0x46e   : > { %v2040_v23 = vsel %vm1608_vm3, %v4184_v21, 0.0  ;;  %v4190_v24 = vpop.eup %3569 }
 0x46f   : > { %v2046_v25 = vsel %vm1608_vm3, %v4190_v24, 0.0 }
 0x48b   : > { %2035 = vadd.xlane.f32.xlu0 %v2034_v17 }
 0x48d   : > { %2032 = vadd.xlane.f32.xlu1 %v2031_v18 }
 0x48f   : > { %2038 = vadd.xlane.f32.xlu0 %v2037_v20 }
 0x491   : > { %2044 = vadd.xlane.f32.xlu1 %v2043_v22 }
 0x493   : > { %2041 = vadd.xlane.f32.xlu0 %v2040_v23 }
 0x497   : > { %2047 = vadd.xlane.f32.xlu0 %v2046_v25 }
 0x4df   : > { %v2027_v27 = vpop.xlane.xlu0 %2026 }
 0x4e0   : > { %3571 = vrcp.f32 %v2027_v27 }
 0x4e1   : > { %v2030_v28 = vpop.xlane.xlu1 %2029 }
 0x4e2   : > { %3573 = vrcp.f32 %v2030_v28 }
 0x4e3   : > { %v1331_v29 = vpop.permute.xlu0 %1330 }
 0x4e4   : > { %v1341_v30 = vshrl.u32 %v1331_v29, 16  ;;  %v4195_v31 = vpack.i.b16 %v1331_v29, %v4005_v53 }
 0x4e5   : > { %v1335_v33 = vpop.permute.xlu1 %1334 }
 0x4e6   : > { %v4198_v35 = vpack.i.b16 %v1335_v33, %v1333_v26  ;;  %v1349_v36 = vshrl.u32 %v1335_v33, 16  ;;  %v4200_v37 = vpack.i.b16 %v1341_v30, %v1340_v32  ;;  %v1359_v38 = vrot.slane %v4195_v31, %v4015_v4 }
 0x4e8   : > { %v1350_v39 = vpack.i.b16 %v1349_v36, %v1348_v34  ;;  %v1374_v40 = vrot.slane %v4198_v35, %v4015_v4  ;;  %v1425_v53 = vrot.slane %v4200_v37, %v4015_v4  ;;  %v1418_v30 = vcombine.high %v4200_v37, %v4013_v0 }
 0x4e9   : > { %v1367_v32 = vcombine.high %v4198_v35, %v4013_v0  ;;  %v1352_v34 = vcombine.high %v4195_v31, %v4013_v0 }
 0x4ea   : > { %v1382_v41 = vcombine.low %v1359_v38, %v1374_v40  ;;  %v1383_v42 = vcombine.high %v1359_v38, %v1374_v40  ;;  %v1440_v43 = vrot.slane %v1350_v39, %v4015_v4  ;;  %v1433_v28 = vcombine.high %v1350_v39, %v4013_v0 }
 0x4eb   : > { %v1432_v35 = vrot.slane %v1418_v30, %v4015_v4  ;;  %v1381_v37 = vrot.slane %v1367_v32, %v4015_v4  ;;  %v1366_v38 = vrot.slane %v1352_v34, %v4015_v4 }
 0x4ec   : > { %v1390_v44 = vrot.slane %v1382_v41, %v4019_v14  ;;  %v1397_v45 = vrot.slane %v1383_v42, %v4019_v14  ;;  %v1448_v46 = vcombine.low %v1425_v53, %v1440_v43  ;;  %v1449_v47 = vcombine.high %v1425_v53, %v1440_v43 }
 0x4ed   : > { %v3572_v2 = vpop.eup %3571  ;;  %v1447_v36 = vrot.slane %v1433_v28, %v4015_v4  ;;  %v1398_v41 = vcombine.low %v1366_v38, %v1381_v37  ;;  %v1399_v42 = vcombine.high %v1366_v38, %v1381_v37 }
 0x4ee   : > { %v1484_v48 = vcombine.low %v1390_v44, %v1397_v45  ;;  %v3178_v49 = vcombine.high %v1390_v44, %v1397_v45  ;;  %v1456_v52 = vrot.slane %v1448_v46, %v4019_v14  ;;  %v1463_v55 = vrot.slane %v1449_v47, %v4019_v14 }
 0x4ef   : > { %v3574_v5 = vpop.eup %3573  ;;  %v2057_v7 = vmul.f32 %v3572_v2, %v4157_v51  ;;  %v1464_v39 = vcombine.low %v1432_v35, %v1447_v36  ;;  %v1465_v40 = vcombine.high %v1432_v35, %v1447_v36  ;;  %v1406_v53 = vrot.slane %v1398_v41, %v4019_v14 }
 0x4f0   : > { %v1491_v56 = vrot.slane %v1484_v48, %v4015_v4  ;;  %v1499_v57 = vrot.slane %v3178_v49, %v4015_v4  ;;  %v1509_v58 = vcombine.low %v1456_v52, %v1463_v55  ;;  %v3179_v59 = vcombine.high %v1456_v52, %v1463_v55 }
 0x4f1   : > { %v2058_v17 = vmul.f32 %v3574_v5, %v4161_v54  ;;  %v2065_v27 = vpack.c.bf16 %v2057_v7, %v2057_v7  ;;  %v1472_v0 = vrot.slane %v1464_v39, %v4019_v14  ;;  %v1479_v31 = vrot.slane %v1465_v40, %v4019_v14 }
 0x4f2   : > { %v1500_v60 = vcombine.low %v1491_v56, %v1499_v57  ;;  %v1516_v61 = vrot.slane %v1509_v58, %v4015_v4  ;;  %v1524_v62 = vrot.slane %v3179_v59, %v4015_v4  ;;  %v1413_v43 = vrot.slane %v1399_v42, %v4019_v14 }
 0x4f3   : > { %v2066_v29 = vpack.c.bf16 %v2058_v17, %v2058_v17  ;;  %v1559_v44 = vcombine.low %v1472_v0, %v1479_v31  ;;  %v3181_v45 = vcombine.high %v1472_v0, %v1479_v31 }
 0x4f4   : > { %v1507_v1 = vrot.slane %v1500_v60, %v4019_v14  ;;  %v1525_v50 = vcombine.low %v1516_v61, %v1524_v62  ;;  %v1534_v46 = vcombine.low %v1406_v53, %v1413_v43  ;;  %v3180_v47 = vcombine.high %v1406_v53, %v1413_v43 }
 0x4f5   : > { %v1566_v48 = vrot.slane %v1559_v44, %v4015_v4  ;;  %v1574_v49 = vrot.slane %v3181_v45, %v4015_v4 }
 0x4f6   : > { %v1508_v3 = vcombine.high %v1507_v1, %v3778_v63  ;;  %v1532_v6 = vrot.slane %v1525_v50, %v4019_v14  ;;  %v1587_v9 = vshrl.u32 %v1507_v1, 16  ;;  %v1541_v55 = vrot.slane %v1534_v46, %v4015_v4 }
 0x4f7   : > { %v1549_v56 = vrot.slane %v3180_v47, %v4015_v4  ;;  %v1575_v58 = vcombine.low %v1566_v48, %v1574_v49 }
 0x4f8   : > { %v1586_v8 = vpack.i.b16 %v1532_v6, %v1507_v1  ;;  %v1588_v10 = vshrl.u32 %v1532_v6, 16  ;;  %v1533_v13 = vcombine.high %v1532_v6, %v3778_v63  ;;  %v1593_v18 = vshrl.u32 %v1508_v3, 16 }
 0x4f9   : > { %v1550_v60 = vcombine.low %v1541_v55, %v1549_v56  ;;  %v1582_v61 = vrot.slane %v1575_v58, %v4019_v14 }
 0x4fa   : > { %v2078_v20 = vsel %vm2076_vm4, %v1586_v8, 0  ;;  %v1589_v22 = vpack.i.b16 %v1588_v10, %v1587_v9  ;;  %v1592_v23 = vpack.i.b16 %v1533_v13, %v1508_v3  ;;  %v1594_v25 = vshrl.u32 %v1533_v13, 16 }
 0x4fb   : > { %3357 = vmatpush3.bf16.msra.mxu1 %v2078_v20  ;;  %v1557_v1 = vrot.slane %v1550_v60, %v4019_v14  ;;  %v1600_v2 = vshrl.u32 %v1582_v61, 16  ;;  %v1583_v9 = vcombine.high %v1582_v61, %v3778_v63 }
 0x4fc   : > { %v2124_v26 = vsel %vm2076_vm4, %v1589_v22, 0  ;;  %3368 = vmatprep.subr.bf16.mxu1 %v3771_v16  ;;  %v1595_v51 = vpack.i.b16 %v1594_v25, %v1593_v18  ;;  %v2170_v54 = vsel %vm2076_vm4, %v1592_v23, 0 }
 0x4fd   : > { %3363 = vmatpush3.bf16.msra.mxu0 %v2124_v26  ;;  %v1599_v5 = vshrl.u32 %v1557_v1, 16  ;;  %v1558_v17 = vcombine.high %v1557_v1, %v3778_v63  ;;  %v1598_v20 = vpack.i.b16 %v1582_v61, %v1557_v1  ;;  %v1606_v23 = vshrl.u32 %v1583_v9, 16 }
 0x4fe   : > { %3359 = vmatmul.mubr.msk.bf16.vlgmr.msra.gmra.mxu1 %vm1608_vm3, %v2065_v27  ;;  %3374 = vmatprep.subr.bf16.mxu0 %v3771_v16  ;;  %v2216_v33 = vsel %vm2076_vm4, %v1595_v51, 0 }
 0x4ff   : > { %3369 = vmatpush3.bf16.msra.mxu1 %v2170_v54  ;;  %3370 = vmatprep.mubr.msk.bf16.mxu1 %vm3772_vm2, %v3771_v16  ;;  %v1601_v8 = vpack.i.b16 %v1600_v2, %v1599_v5  ;;  %v1605_v26 = vshrl.u32 %v1558_v17, 16  ;;  %v2262_v63 = vsel %vm2076_vm4, %v1598_v20, 0  ;;  %v1604_v30 = vpack.i.b16 %v1583_v9, %v1558_v17 }
 0x500   : > { %3365 = vmatmul.mubr.msk.bf16.vlgmr.msra.gmra.mxu0 %vm1608_vm3, %v2066_v29  ;;  %3380 = vmatprep.subr.bf16.mxu1 %v3771_v16 }
 0x501   : > { %3375 = vmatpush3.bf16.msra.mxu0 %v2216_v33  ;;  %3376 = vmatprep.mubr.msk.bf16.mxu0 %vm3772_vm2, %v3771_v16  ;;  %v2308_v22 = vsel %vm2076_vm4, %v1601_v8, 0  ;;  %v1607_v51 = vpack.i.b16 %v1606_v23, %v1605_v26 }
 0x502   : > { %3386 = vmatprep.subr.bf16.mxu0 %v3771_v16 }
 0x503   : > { %v2400_v32 = vsel %vm2076_vm4, %v1607_v51, 0 }
 0x514   : > { %v2036_v52 = vpop.xlane.xlu0 %2035 }
 0x515   : > { %3575 = vrcp.f32 %v2036_v52 }
 0x516   : > { %v2033_v57 = vpop.xlane.xlu1 %2032 }
 0x517   : > { %3577 = vrcp.f32 %v2033_v57 }
 0x518   : > { %v2039_v59 = vpop.xlane.xlu0 %2038 }
 0x519   : > { %3579 = vrcp.f32 %v2039_v59 }
 0x51a   : > { %v2045_v3 = vpop.xlane.xlu1 %2044 }
 0x51c   : > { %v2042_v62 = vpop.xlane.xlu0 %2041 }
 0x51d   : > { %3581 = vrcp.f32 %v2042_v62 }
 0x520   : > { %v2048_v50 = vpop.xlane.xlu0 %2047 }
 0x521   : > { %3583 = vrcp.f32 %v2048_v50 }
 0x522   : > { %v3576_v6 = vpop.eup %3575  ;;  %3585 = vrcp.f32 %v2045_v3 }
 0x523   : > { %v2060_v7 = vmul.f32 %v3576_v6, %v4170_v12 }
 0x524   : > { %v3578_v10 = vpop.eup %3577 }
 0x525   : > { %v2068_v13 = vpack.c.bf16 %v2060_v7, %v2060_v7  ;;  %v2059_v18 = vmul.f32 %v3578_v10, %v4172_v15 }
 0x526   : > { %v3580_v12 = vpop.eup %3579 }
 0x527   : > { %3377 = vmatmul.mubr.msk.bf16.vlgmr.msra.gmra.mxu0 %vm1608_vm3, %v2068_v13  ;;  %v2067_v25 = vpack.c.bf16 %v2059_v18, %v2059_v18  ;;  %v2061_v28 = vmul.f32 %v3580_v12, %v4176_v11  ;;  %v2354_v11 = vsel %vm2076_vm4, %v1604_v30, 0 }
 0x528   : > { %3387 = vmatpush3.bf16.msra.mxu0 %v2308_v22  ;;  %3388 = vmatprep.mubr.msk.bf16.mxu0 %vm3772_vm2, %v3771_v16 }
 0x529   : > { %3398 = vmatprep.subr.bf16.mxu0 %v3771_v16  ;;  %3371 = vmatmul.mubr.msk.bf16.vlgmr.msra.gmra.mxu1 %vm1608_vm3, %v2067_v25  ;;  %v2069_v33 = vpack.c.bf16 %v2061_v28, %v2061_v28 }
 0x52a   : > { %v3582_v27 = vpop.eup %3581  ;;  %3381 = vmatpush3.bf16.msra.mxu1 %v2262_v63  ;;  %3382 = vmatprep.mubr.msk.bf16.mxu1 %vm3772_vm2, %v3771_v16 }
 0x52b   : > { %v2062_v15 = vmul.f32 %v3582_v27, %v4184_v21  ;;  %3392 = vmatprep.subr.bf16.mxu1 %v3771_v16 }
 0x52d   : > { %v2070_v54 = vpack.c.bf16 %v2062_v15, %v2062_v15 }
 0x52e   : > { %v3584_v29 = vpop.eup %3583 }
 0x52f   : > { %3389 = vmatmul.mubr.msk.bf16.vlgmr.msra.gmra.mxu0 %vm1608_vm3, %v2070_v54  ;;  %v3586_v21 = vpop.eup %3585  ;;  %v2064_v34 = vmul.f32 %v3584_v29, %v4190_v24 }
 0x530   : > { %3399 = vmatpush3.bf16.msra.mxu0 %v2400_v32  ;;  %3400 = vmatprep.mubr.msk.bf16.mxu0 %vm3772_vm2, %v3771_v16  ;;  %v2063_v36 = vmul.f32 %v3586_v21, %v4180_v19 }
 0x531   : > { %3412 = vmatprep.subr.bf16.mxu0 %v3771_v16  ;;  %3383 = vmatmul.mubr.msk.bf16.vlgmr.msra.gmra.mxu1 %vm1608_vm3, %v2069_v33  ;;  %v2072_v35 = vpack.c.bf16 %v2064_v34, %v2064_v34 }
 0x532   : > { %3393 = vmatpush3.bf16.msra.mxu1 %v2354_v11  ;;  %3394 = vmatprep.mubr.msk.bf16.mxu1 %vm3772_vm2, %v3771_v16  ;;  %v2071_v37 = vpack.c.bf16 %v2063_v36, %v2063_v36 }
 0x533   : > { %3404 = vmatprep.subr.bf16.mxu1 %v3771_v16 }
 0x537   : > { %3401 = vmatmul.mubr.msk.bf16.vlgmr.msra.gmra.mxu0 %vm1608_vm3, %v2072_v35 }
 0x538   : > { %3416 = vmatprep.mubr.msk.bf16.mxu0 %vm3772_vm2, %v3771_v16 }
 0x539   : > { %3395 = vmatmul.mubr.msk.bf16.vlgmr.msra.gmra.mxu1 %vm1608_vm3, %v2071_v37 }
 0x53a   : > { %3408 = vmatprep.mubr.msk.bf16.mxu1 %vm3772_vm2, %v3771_v16 }
 0x5be   : > { %v2114_v24 = vpop.f32.mrf.mxu1 }
 0x5c0   : > { %v3360_v38 = vpop.f32.mrf.mxu1  ;;  %v2160_v39 = vpop.f32.mrf.mxu0 }
 0x5c2   : > { %v2117_v40 = vpop.f32.mrf.mxu1  ;;  %v3366_v41 = vpop.f32.mrf.mxu0 }
 0x5c4   : > { %v3361_v19 = vpop.f32.mrf.mxu1  ;;  %v2163_v42 = vpop.f32.mrf.mxu0 }
 0x5c6   : > { %v3367_v0 = vpop.f32.mrf.mxu0 }
 0x5e7   : > { %v2252_v31 = vpop.f32.mrf.mxu0 }
 0x5e8   : > { %v2458_v53 = vcombine.low %v2160_v39, %v2252_v31  ;;  %v2459_v43 = vcombine.high %v2160_v39, %v2252_v31 }
 0x5e9   : > { %v3378_v44 = vpop.f32.mrf.mxu0  ;;  %v2206_v45 = vpop.f32.mrf.mxu1 }
 0x5ea   : > { %v2442_v46 = vcombine.low %v2114_v24, %v2206_v45  ;;  %v2443_v47 = vcombine.high %v2114_v24, %v2206_v45  ;;  %v2466_v52 = vrot.slane %v2458_v53, %v4015_v4  ;;  %v2473_v55 = vrot.slane %v2459_v43, %v4015_v4 }
 0x5eb   : > { %v2255_v48 = vpop.f32.mrf.mxu0  ;;  %v3372_v49 = vpop.f32.mrf.mxu1 }
 0x5ec   : > { %v2450_v56 = vrot.slane %v2442_v46, %v4015_v4  ;;  %v2457_v57 = vrot.slane %v2443_v47, %v4015_v4 }
 0x5ed   : > { %v3379_v58 = vpop.f32.mrf.mxu0  ;;  %v2209_v59 = vpop.f32.mrf.mxu1 }
 0x5ee   : > { %v2474_v60 = vcombine.low %v2450_v56, %v2466_v52  ;;  %v2475_v61 = vcombine.high %v2450_v56, %v2466_v52  ;;  %v2490_v62 = vcombine.low %v2457_v57, %v2473_v55  ;;  %v2491_v1 = vcombine.high %v2457_v57, %v2473_v55 }
 0x5ef   : > { %v2344_v2 = vpop.f32.mrf.mxu0  ;;  %v3373_v50 = vpop.f32.mrf.mxu1 }
 0x5f0   : > { %v2482_v3 = vrot.slane %v2474_v60, %v4019_v14  ;;  %v2489_v5 = vrot.slane %v2475_v61, %v4019_v14  ;;  %v2498_v6 = vrot.slane %v2490_v62, %v4019_v14  ;;  %v2505_v7 = vrot.slane %v2491_v1, %v4019_v14  ;;  %v3543_v1 = vld [vmem:[%s2748_s18 + $0x8] sm:$0xff]  }
 0x5f1   : > { %v3390_v8 = vpop.f32.mrf.mxu0  ;;  %v2298_v9 = vpop.f32.mrf.mxu1  ;;  %3405 = vmatpush3.bf16.msra.mxu1 %v3543_v1  ;;  %v3547_v1 = vld [vmem:[%s4366_s28 + $0x18] sm:$0xff]  }
 0x5f2   : > { %v2578_v10 = vcombine.low %v2482_v3, %v2489_v5  ;;  %v3198_v13 = vcombine.high %v2482_v3, %v2489_v5  ;;  %v2594_v17 = vcombine.low %v2498_v6, %v2505_v7  ;;  %v3199_v18 = vcombine.high %v2498_v6, %v2505_v7  ;;  %3406 = vmatprep.subr.bf16.mxu1 %v3771_v16 }
 0x5f3   : > { %v2347_v20 = vpop.f32.mrf.mxu0  ;;  %v3384_v22 = vpop.f32.mrf.mxu1 }
 0x5f4   : > { %v2585_v23 = vrot.slane %v2578_v10, %v4015_v4  ;;  %v2593_v25 = vrot.slane %v3198_v13, %v4015_v4  ;;  %v2601_v12 = vrot.slane %v2594_v17, %v4015_v4  ;;  %v2609_v26 = vrot.slane %v3199_v18, %v4015_v4  ;;  %v3544_v13 = vld [vmem:[%s2748_s18] sm:$0xff]   ;;  %s3040_s18 = sshll.u32 %s3782_s1, 4  ;;  %s3041_s18 = int_to_ptr.vmem [resolvable:$true] %s3040_s18 }
 0x5f5   : > { %v3391_v27 = vpop.f32.mrf.mxu0  ;;  %v2301_v63 = vpop.f32.mrf.mxu1  ;;  %3407 = vmatpush3.bf16.msra.mxu1 %v3544_v13  ;;  %p3704_p8 = scmp.lt.s32.totalorder %s3041_s18, %s3041_s18 }
 0x5f6   : > { %v2610_v51 = vcombine.low %v2585_v23, %v2593_v25  ;;  %v2626_v28 = vcombine.low %v2601_v12, %v2609_v26  ;;  %v2611_v49 = vcombine.high %v2585_v23, %v2593_v25  ;;  %v2627_v52 = vcombine.high %v2601_v12, %v2609_v26  ;;  %3420 = vmatprep.subr.bf16.mxu1 %v3771_v16 }
 0x5f7   : > { %v2436_v15 = vpop.f32.mrf.mxu0  ;;  %v3385_v54 = vpop.f32.mrf.mxu1 }
 0x5f8   : > { %v2526_v29 = vcombine.low %v2344_v2, %v2436_v15  ;;  %v2527_v30 = vcombine.high %v2344_v2, %v2436_v15  ;;  %v4305_v33 = vrot.slane %v2610_v51, %v4019_v14  ;;  %v4308_v21 = vrot.slane %v2626_v28, %v4019_v14 }
 0x5f9   : > { %v3402_v32 = vpop.f32.mrf.mxu0  ;;  %v2390_v34 = vpop.f32.mrf.mxu1  ;;  %v2625_v2 = vrot.slane %v2611_v49, %v4019_v14  ;;  %v2641_v50 = vrot.slane %v2627_v52, %v4019_v14 }
 0x5fa   : > { %v2510_v11 = vcombine.low %v2298_v9, %v2390_v34  ;;  %v2511_v36 = vcombine.high %v2298_v9, %v2390_v34  ;;  %v2642_v37 = vcombine.low %v4305_v33, %v4308_v21  ;;  %v2534_v38 = vrot.slane %v2526_v29, %v4015_v4 }
 0x5fb   : > { %v2439_v35 = vpop.f32.mrf.mxu0  ;;  %v3396_v24 = vpop.f32.mrf.mxu1  ;;  %v2541_v39 = vrot.slane %v2527_v30, %v4015_v4  ;;  %v2644_v17 = vcombine.low %v2625_v2, %v2641_v50  ;;  %v2643_v20 = vcombine.high %v4305_v33, %v4308_v21  ;;  %v3203_v33 = vld [vmem:[%s2753_s27] ss:$0 sm:$0xff] }
 0x5fc   : > { %v2518_v40 = vrot.slane %v2510_v11, %v4015_v4  ;;  %v2525_v41 = vrot.slane %v2511_v36, %v4015_v4 }
 0x5fd   : > { %v3403_v19 = vpop.f32.mrf.mxu0  ;;  %v2393_v42 = vpop.f32.mrf.mxu1 }
 0x5fe   : > { %v2542_v0 = vcombine.low %v2518_v40, %v2534_v38  ;;  %v2543_v31 = vcombine.high %v2518_v40, %v2534_v38  ;;  %v2558_v53 = vcombine.low %v2525_v41, %v2541_v39  ;;  %v2559_v43 = vcombine.high %v2525_v41, %v2541_v39  ;;  %v3591_v19 = vld [vmem:[#allocation10] sm:$0xff] }
 0x5ff   : > { %v3397_v44 = vpop.f32.mrf.mxu1 }
 0x600   : > { %v2550_v45 = vrot.slane %v2542_v0, %v4019_v14  ;;  %v2557_v46 = vrot.slane %v2543_v31, %v4019_v14  ;;  %v2566_v47 = vrot.slane %v2558_v53, %v4019_v14  ;;  %v2573_v48 = vrot.slane %v2559_v43, %v4019_v14  ;;  %v3592_v44 = vld [vmem:[#allocation10 + $0x8] sm:$0xff] }
 0x602   : > { %v2646_v55 = vcombine.low %v2550_v45, %v2557_v46  ;;  %v3200_v56 = vcombine.high %v2550_v45, %v2557_v46  ;;  %v2662_v57 = vcombine.low %v2566_v47, %v2573_v48  ;;  %v3201_v58 = vcombine.high %v2566_v47, %v2573_v48 }
 0x604   : > { %v2653_v59 = vrot.slane %v2646_v55, %v4015_v4  ;;  %v2661_v60 = vrot.slane %v3200_v56, %v4015_v4  ;;  %v2669_v61 = vrot.slane %v2662_v57, %v4015_v4  ;;  %v2677_v62 = vrot.slane %v3201_v58, %v4015_v4 }
 0x606   : > { %v2679_v3 = vcombine.high %v2653_v59, %v2661_v60  ;;  %v2695_v5 = vcombine.high %v2669_v61, %v2677_v62  ;;  %v2678_v6 = vcombine.low %v2653_v59, %v2661_v60  ;;  %v2694_v7 = vcombine.low %v2669_v61, %v2677_v62  ;;  %v3545_v61 = vld [vmem:[%s2867_s24 + $0x8] sm:$0xff]   ;;  %v3546_v62 = vld [vmem:[%s2867_s24] sm:$0xff]  }
 0x607   : > { %3413 = vmatpush3.bf16.msra.mxu0 %v3545_v61 }
 0x608   : > { %v2693_v8 = vrot.slane %v2679_v3, %v4019_v14  ;;  %v2709_v9 = vrot.slane %v2695_v5, %v4019_v14  ;;  %v2686_v10 = vrot.slane %v2678_v6, %v4019_v14  ;;  %v2702_v4 = vrot.slane %v2694_v7, %v4019_v14  ;;  %3414 = vmatprep.subr.bf16.mxu0 %v3771_v16 }
 0x609   : > { %v2645_v14 = vcombine.high %v2625_v2, %v2641_v50 }
 0x60a   : > { %v2712_v18 = vcombine.low %v2693_v8, %v2709_v9  ;;  %v2711_v22 = vcombine.high %v2686_v10, %v2702_v4  ;;  %v2710_v23 = vcombine.low %v2686_v10, %v2702_v4  ;;  %v2713_v26 = vcombine.high %v2693_v8, %v2709_v9 }
 0x60b   : > { %3415 = vmatpush3.bf16.msra.mxu0 %v3546_v62 }
 0x60c   : > { %v3527_v25 = vpack.i.bf16 %v2712_v18, %v2644_v17  ;;  %v3522_v12 = vpack.i.bf16 %v2711_v22, %v2643_v20  ;;  %v3532_v27 = vpack.i.bf16 %v2713_v26, %v2645_v14  ;;  %v3208_v18 = vld [vmem:[%s2821_s23] ss:$0 sm:$0xff]  ;;  %v3549_v26 = vld [vmem:[%s4366_s28 + $0x8] sm:$0xff]  }
 0x60d   : > { %v3550_v14 = vld [vmem:[%s4366_s28] sm:$0xff]  }
 0x60e   : > { %3528 = vrot.lane.b32.xlu0 %v3527_v25, %s3779_s25  ;;  %3523 = vrot.lane.b32.xlu1 %v3522_v12, %s3780_s26  ;;  %s2819_s25 = scalar_lea.vmem %s4431_s8, %s3751_s29  ;;  %v3548_v12 = vld [vmem:[%s4366_s28 + $0x10] sm:$0xff]   ;;  %s2950_s28 = scalar_lea.vmem %s4436_s13, %s3751_s29 }
 0x60f   : > { %v3207_v10 = vld [vmem:[%s2819_s25] ss:$0 sm:$0xff]  ;;  %s4445_s25 = sadd.s32 4294967295, %s3759_s15   ;;  %s3697_s29 = scalar_lea.vmem %s3041_s18, 256 }
 0x610   : > { %p4396_p2 = scmp.eq.s32.totalorder %s4445_s25, 1  ;;  %p3698_p5 = scmp.ne.s32.totalorder %s3041_s18, %s3697_s29 }
 0x611   : > { %p3705_p9 = scmp.lt.s32.totalorder %s3697_s29, %s3697_s29 }
 0x612   : > { %3533 = vrot.lane.b32.xlu1 %v3532_v27, %s3781_s16  ;;  %v3210_v27 = vld [vmem:[%s2872_s19] ss:$0 sm:$0xff]  ;;  %p3699_p7 = pnand %p3698_p5, %p4396_p2 }
 0x613   : > { %p3706_p10 = por %p3705_p9, %p3704_p8 }
 0x614   : > { %p3700_p4 = pneg %p3699_p7 }
 0x616   : > { %p3707_p11 = pnand %p3706_p10, %p3700_p4 }
 0x680   : > { %v3529_v63 = vpop.permute.xlu0 %3528  ;;  %v3524_v15 = vpop.permute.xlu1 %3523 }
 0x681   : > { %v3526_v51 = vunpack.i.h.bf16 %v3524_v15  ;;  %v3525_v28 = vunpack.i.l.bf16 %v3524_v15  ;;  %v3531_v54 = vunpack.i.h.bf16 %v3529_v63  ;;  %v3530_v29 = vunpack.i.l.bf16 %v3529_v63 }
 0x683   : > { %v2738_v30 = vsel %vm1608_vm3, %v2642_v37, %v3525_v28  ;;  %v2739_v32 = vsel %vm1608_vm3, %v2710_v23, %v3526_v51 }
 0x684   : > { %v3534_v34 = vpop.permute.xlu1 %3533  ;;  %v2741_v35 = vsel %vm2740_vm5, %v2738_v30, %v3530_v29  ;;  %v2742_v24 = vsel %vm2740_vm5, %v2739_v32, %v3531_v54 }
 0x685   : > { %v3536_v11 = vunpack.i.h.bf16 %v3534_v34  ;;  %v3535_v36 = vunpack.i.l.bf16 %v3534_v34 }
 0x687   : > { %v2744_v38 = vsel %vm2743_vm6, %v2741_v35, %v3535_v36  ;;  %v2745_v39 = vsel %vm2743_vm6, %v2742_v24, %v3536_v11 }
 0x688   : > { %v2746_v40 = vpack.c.bf16 %v2745_v39, %v2744_v38 }
 0x68a   : > { %3409 = vmatmul.mubr.msk.bf16.vlgmr.msra.gmra.mxu1 %vm536_vm1, %v2746_v40 }
 0x68b   : > { %3428 = vmatprep.mubr.msk.bf16.mxu1 %vm3772_vm2, %v3771_v16  ;;  %3421 = vmatpush3.bf16.msra.mxu1 %v3547_v1 }
 0x68c   : > { %3422 = vmatprep.subr.bf16.mxu1 %v3771_v16 }
 0x68f   : > { %3423 = vmatpush3.bf16.msra.mxu1 %v3548_v12 }
 0x690   : > { %3424 = vmatprep.subr.bf16.mxu1 %v3771_v16 }
 0x693   : > { %3425 = vmatpush3.bf16.msra.mxu1 %v3549_v26 }
 0x694   : > { %3426 = vmatprep.subr.bf16.mxu1 %v3771_v16  ;;  %v3216_v16 = vld [vmem:[%s2950_s28] ss:$0 sm:$0xff] }
 0x697   : > { %3427 = vmatpush3.bf16.msra.mxu1 %v3550_v14 }
 0x74a   : > { %v2810_v21 = vpop.f32.mrf.mxu1 }
 0x74b   : > { %v2811_v37 = vadd.f32 %v3203_v33, %v2810_v21 }
 0x74c   : > { %v3410_v41 = vpop.f32.mrf.mxu1 }
 0x74d   : > { %v4348_v42 = vadd.f32 %v3591_v19, %v2811_v37 }
 0x74e   : > { %v2813_v0 = vpop.f32.mrf.mxu1 }
 0x74f   : > { %v2814_v31 = vadd.f32 %v3203_v33, %v2813_v0  ;;  %v2823_v53 = vsel %vm536_vm1, %v4348_v42, 0.0 }
 0x750   : > { %2824 = vadd.xlane.f32.xlu1 %v2823_v53  ;;  %v3411_v43 = vpop.f32.mrf.mxu1 }
 0x751   : > { %v4352_v45 = vadd.f32 %v3592_v44, %v2814_v31 }
 0x753   : > { %v2826_v46 = vsel %vm536_vm1, %v4352_v45, 0.0 }
 0x754   : > { %2827 = vadd.xlane.f32.xlu0 %v2826_v46 }
 0x7d9   : > { %v2825_v47 = vpop.xlane.xlu1 %2824 }
 0x7da   : > { %v2829_v48 = vmul.f32 0.03125, %v2825_v47 }
 0x7dc   : > { %v2831_v49 = vsub.f32 %v4348_v42, %v2829_v48 }
 0x7dd   : > { %v2828_v52 = vpop.xlane.xlu0 %2827 }
 0x7de   : > { %v2830_v55 = vmul.f32 0.03125, %v2828_v52  ;;  %v2833_v56 = vmul.f32 %v2831_v49, %v2831_v49 }
 0x7e0   : > { %v2832_v57 = vsub.f32 %v4352_v45, %v2830_v55  ;;  %v2835_v58 = vsel %vm536_vm1, %v2833_v56, 0.0 }
 0x7e1   : > { %2836 = vadd.xlane.f32.xlu0 %v2835_v58 }
 0x7e2   : > { %v2834_v59 = vmul.f32 %v2832_v57, %v2832_v57 }
 0x7e4   : > { %v2838_v60 = vsel %vm536_vm1, %v2834_v59, 0.0 }
 0x7e5   : > { %2839 = vadd.xlane.f32.xlu1 %v2838_v60 }
 0x86a   : > { %v2837_v2 = vpop.xlane.xlu0 %2836 }
 0x86b   : > { %v2841_v50 = vmul.f32 0.03125, %v2837_v2 }
 0x86d   : > { %v2843_v3 = vadd.f32 1e-05, %v2841_v50 }
 0x86e   : > { %v2840_v5 = vpop.xlane.xlu1 %2839 }
 0x86f   : > { %3587 = vrsqrt.f32 %v2843_v3  ;;  %v2842_v6 = vmul.f32 0.03125, %v2840_v5 }
 0x871   : > { %v2844_v7 = vadd.f32 1e-05, %v2842_v6 }
 0x873   : > { %3589 = vrsqrt.f32 %v2844_v7 }
 0x87c   : > { %v3588_v8 = vpop.eup %3587 }
 0x87d   : > { %v2847_v9 = vmul.f32 %v3588_v8, %v2831_v49 }
 0x87f   : > { %v2855_v17 = vmul.f32 %v3207_v10, %v2847_v9 }
 0x880   : > { %v3590_v4 = vpop.eup %3589 }
 0x881   : > { %v2848_v13 = vmul.f32 %v3590_v4, %v2832_v57  ;;  %v2863_v22 = vadd.f32 %v3208_v18, %v2855_v17 }
 0x883   : > { %v2856_v20 = vmul.f32 %v3207_v10, %v2848_v13 }
 0x885   : > { %v2864_v23 = vadd.f32 %v3208_v18, %v2856_v20 }
 0x887   : > { %v2865_v25 = vpack.c.bf16 %v2864_v23, %v2863_v22 }
 0x889   : > { %3417 = vmatmul.mubr.msk.bf16.vlgmr.msra.gmra.mxu0 %vm536_vm1, %v2865_v25 }
 0x949   : > { %v2929_v63 = vpop.f32.mrf.mxu0 }
 0x94a   : > { %v2930_v51 = vadd.f32 %v3210_v27, %v2929_v63 }
 0x94b   : > { %v3418_v15 = vpop.f32.mrf.mxu0 }
 0x94c   : > { %v2936_v30 = vmax.f32 %v2930_v51, 0.0 }
 0x94d   : > { %v2932_v28 = vpop.f32.mrf.mxu0 }
 0x94e   : > { %v2933_v54 = vadd.f32 %v3210_v27, %v2932_v28 }
 0x94f   : > { %v3419_v29 = vpop.f32.mrf.mxu0 }
 0x950   : > { %v2937_v32 = vmax.f32 %v2933_v54, 0.0 }
 0x952   : > { %v2938_v34 = vpack.c.bf16 %v2937_v32, %v2936_v30 }
 0x954   : > { %3429 = vmatmul.mubr.msk.bf16.vlgmr.msra.gmra.mxu1 %vm2982_vm7, %v2938_v34 }
 0xa14   : > { %v3020_v11 = vpop.f32.mrf.mxu1 }
 0xa15   : > { %v3021_v36 = vadd.f32 %v3216_v16, %v3020_v11 }
 0xa16   : > { %v3430_v35 = vpop.f32.mrf.mxu1 }
 0xa17   : > { %v3027_v24 = vadd.f32 %v3021_v36, %v4348_v42 }
 0xa18   : > { %v3023_v38 = vpop.f32.mrf.mxu1 }
 0xa19   : > { %3029 = vst.msk [vmem:[#allocation10] sm:$0xff] %vm536_vm1, %v3027_v24  ;;  %v3024_v39 = vadd.f32 %v3216_v16, %v3023_v38 }
 0xa1a   : > { %v3431_v40 = vpop.f32.mrf.mxu1 }
 0xa1b   : > { %v3028_v33 = vadd.f32 %v3024_v39, %v4352_v45 }
 0xa1d   : > { %3030 = vst.msk [vmem:[#allocation10 + $0x8] sm:$0xff] %vm536_vm1, %v3028_v33 }
 0xa1e   : > { %3710 = shalt.err (!%p3707_p11)
}
 0xa1f   : > { %s3783_s17 = smov 128  }
 0xa20   : > { %3449 = dma.vmem_to_hbm [thread:$0]  (%p4396_p2), %s3041_s18, 256, %s4437_s14, [#allocation4], %s3783_s17, %s3783_s17, %s3780_s26  }
 0xa21   : > { %3746 = dma.done.wait (%p4396_p2), [#allocation4], 256  }
 0xa22   : > { %3748 = vsyncadd (%p4396_p2), [#allocation4], 4294967040 }
 0xa23 PF: > { %s28_s15 = sadd.s32 1, %s3759_s15   ;;  %s4447_s29 = smov %s3755_s30 }
 0xa24   : > { %p25_p12 = scmp.ge.s32.totalorder %s28_s15, 4   ;;  %s4448_s30 = smov %s4450_s22 }
 0xa26   :  { %27 = sbr.rel (!%p25_p12) target bundleno = 7 (0x7), region = 136 }
 0xa2b   :  { %3056 = vsyncpa [#allocation3], 1 }
 0xa2c   :  { %3058 = vsyncpa [#allocation3 + $0x1], 1 }
 0xa2d   :  { %3059 = vsyncpa [#allocation6], 1 }
 0xa2e   :  { %3060 = vsyncpa [#allocation9], 1 }
 0xa2f   :  { %3061 = vsyncpa [#allocation4], 1 }
 0xa30   :  { %3063 = vsyncpa [#allocation4 + $0x1], 1 }

</bundles_post_ra>
